<compile_context>
chip_gen: v5e
topology: v5e:2x2
jax: 0.10.0
libtpu: 0.0.40
codegen_flags: <defaults>
</compile_context>

<pallas_src>
import functools

import jax
import jax.numpy as jnp
from jax import lax
from jax.experimental import pallas as pl
from jax.experimental.pallas import tpu as pltpu


# ---------------- model hyper-parameters (small, deterministic) ----------------
VOCAB_SIZE = 100
EMB_SIZE = 16
LSTM_HIDDEN_SIZE = 16          # first-stage LSTM hidden size (defines A's feature dim)
BIDIRECTIONAL = True           # => A has 2 * LSTM_HIDDEN_SIZE features
LSTM_HIDDEN_SIZE2 = 32         # H2
LSTM_HIDDEN_LAYER2 = 1         # single layer => dropout is a no-op
BIDIRECTIONAL2 = False         # unidirectional second LSTM
RELATION_SIZE = 8

A_DIM = 2 * LSTM_HIDDEN_SIZE if BIDIRECTIONAL else LSTM_HIDDEN_SIZE   # 32
D_IN = EMB_SIZE + A_DIM                                               # 48
H2 = LSTM_HIDDEN_SIZE2                                                # 32
FOUR_H = 4 * H2                                                       # 128
R_PAD = ((RELATION_SIZE + 127) // 128) * 128                          # 128 (lane-dense)
VOCAB_PAD = ((VOCAB_SIZE + 127) // 128) * 128                         # 128

BATCH = 2
SEQ = 8

# ---- packed weight slab layout (single VMEM input; 128 lanes, 8-row-aligned blocks) ----
ROW_TBL = 0                        # fused embedding->gates table   rows [0, 128)
ROW_WA = ROW_TBL + VOCAB_PAD       # W_ih(A stream)^T               rows [128, 160)
ROW_WHH = ROW_WA + A_DIM           # W_hh^T                         rows [160, 192)
ROW_WOUT = ROW_WHH + H2            # W_out^T (lane-padded to 128)   rows [192, 224)
ROW_B = ROW_WOUT + H2              # b_ih + b_hh                    row 224
ROW_BOUT = ROW_B + 8               # b_out (lane-padded to 128)     row 232
SLAB_ROWS = ROW_BOUT + 8           # 240 rows total (~120 KiB f32)


# ------------------------ one-time weight packing (init) ------------------------
def pack_params(params):
    """Pack every weight/bias into one 128-lane-aligned f32 slab (done once at init)."""
    w_ih_t = params["w_ih"].T.astype(jnp.float32)              # (D_IN, 4H)
    w_emb = w_ih_t[:EMB_SIZE, :]                               # (EMB, 4H)
    w_a = w_ih_t[EMB_SIZE:, :]                                 # (A_DIM, 4H)
    # Fuse the embedding lookup with its input projection: row v of `tbl` is the
    # gate-space contribution of token v, so the in-kernel one-hot matmul replaces both
    # the wrapper gather and the embedding-stream matmul.
    tbl = jnp.dot(params["embedding"].astype(jnp.float32), w_emb,
                  precision=lax.Precision.HIGHEST)             # (VOCAB, 4H)

    slab = jnp.zeros((SLAB_ROWS, FOUR_H), jnp.float32)
    slab = slab.at[ROW_TBL:ROW_TBL + VOCAB_SIZE, :].set(tbl)
    slab = slab.at[ROW_WA:ROW_WA + A_DIM, :].set(w_a)
    slab = slab.at[ROW_WHH:ROW_WHH + H2, :].set(params["w_hh"].T.astype(jnp.float32))
    slab = slab.at[ROW_WOUT:ROW_WOUT + H2, :RELATION_SIZE].set(
        params["w_out"].T.astype(jnp.float32))
    slab = slab.at[ROW_B, :].set((params["b_ih"] + params["b_hh"]).astype(jnp.float32))
    slab = slab.at[ROW_BOUT, :RELATION_SIZE].set(params["b_out"].astype(jnp.float32))
    return slab


# ---------------------------- Pallas kernel -----------------------------------
def _lstm_relation_kernel(ids_ref, a_ref, slab_ref, out_ref, gates_scr, h_scr, *,
                          batch, batch_pad, seq):
    """Single-layer unidirectional LSTM (PyTorch gate order i,f,g,o) + Linear + Sigmoid.

    ids_ref   : (B*T, 1)   int32, batch-major rows (r = b*T + t)
    a_ref     : (B*T, A_DIM) f32, batch-major rows
    slab_ref  : (SLAB_ROWS, 128) packed weights (see ROW_* layout)
    out_ref   : (T*B_pad, R_PAD) time-major, lane-dense sigmoid(Linear(h))
    gates_scr : (T, B_pad, 4H) VMEM scratch, time-major staged input gates
    h_scr     : (T, B_pad, H2) VMEM scratch, collected hidden states (write-only in loop)
    """
    B, BP, T = batch, batch_pad, seq

    # ---- one-time weight loads: static, 8-aligned sublane slices of the slab ----
    w_in = slab_ref[ROW_TBL:ROW_WA + A_DIM, :]        # (VOCAB_PAD + A_DIM, 4H)
    whh = slab_ref[ROW_WHH:ROW_WHH + H2, :]           # (H2, 4H)
    wout = slab_ref[ROW_WOUT:ROW_WOUT + H2, :]        # (H2, R_PAD)
    bias = slab_ref[ROW_B:ROW_B + 1, :]               # (1, 4H)
    bout = slab_ref[ROW_BOUT:ROW_BOUT + 1, :]         # (1, R_PAD)

    # ---- in-kernel embedding gather as a one-hot MXU matmul (no wrapper jnp.take) ----
    onehot = (ids_ref[...] ==
              lax.broadcasted_iota(jnp.int32, (B * T, VOCAB_PAD), 1)
              ).astype(jnp.float32)                   # (B*T, VOCAB_PAD)

    # ---- hoisted input projection: ONE matmul for [embedding | A] -> gates ----
    x_cat = jnp.concatenate([onehot, a_ref[...]], axis=1)        # (B*T, VOCAB_PAD+A_DIM)
    gates_bm = jnp.dot(x_cat, w_in,
                       preferred_element_type=jnp.float32) + bias  # (B*T, 4H) batch-major

    # ---- stage gates into a time-major, sublane-padded scratch (off the serial chain).
    # The reorder cost (row extracts + concats) is paid once here so that every step of
    # the serial recurrence below gets a single aligned (B_pad, 4H) load.
    pad_rows = BP - B
    zeros_pad = jnp.zeros((pad_rows, FOUR_H), jnp.float32) if pad_rows else None
    for t in range(T):
        rows = [gates_bm[b * T + t:b * T + t + 1, :] for b in range(B)]
        if pad_rows:
            rows.append(zeros_pad)
        gates_scr[t] = jnp.concatenate(rows, axis=0) if len(rows) > 1 else rows[0]

    # ---- recurrence: h/c vreg-resident, aligned full-sublane tiles per step ----
    # TODO(synk): production T -> lax.fori_loop(..., unroll=k); keep whh MXU-resident via
    #             pltpu.matmul_push_rhs/acc_lhs/pop; lane-roll-free gate layout.
    h = jnp.zeros((BP, H2), jnp.float32)
    c = jnp.zeros((BP, H2), jnp.float32)
    for t in range(T):                                           # static unroll (T = 8)
        g = gates_scr[t] + jnp.dot(h, whh,
                                   preferred_element_type=jnp.float32)   # (BP, 4H)
        sig = jax.nn.sigmoid(g)                                  # one full-vreg EUP pass
        th = jnp.tanh(g)                                         # one full-vreg EUP pass
        i_g = sig[:, 0 * H2:1 * H2]
        f_g = sig[:, 1 * H2:2 * H2]
        g_g = th[:, 2 * H2:3 * H2]
        o_g = sig[:, 3 * H2:4 * H2]
        c = f_g * c + i_g * g_g
        h = o_g * jnp.tanh(c)
        h_scr[t] = h                                             # aligned, write-only

    # ---- deferred output head: one matmul + one sigmoid + one lane-dense store ----
    h_all = h_scr[...].reshape(T * BP, H2)                       # layout-trivial merge
    logits = jnp.dot(h_all, wout, preferred_element_type=jnp.float32) + bout
    out_ref[...] = jax.nn.sigmoid(logits)                        # unmasked (T*BP,128) vst


# ------------------------------ wrapper (per call) ------------------------------
def lstm_relation_block_forward(input_ids, A, slab):
    """input_ids: (B, T) int32; A: (B, T, A_DIM) f32; slab: pack_params(params).
    Returns (B, T, RELATION_SIZE)."""
    B, T = input_ids.shape
    BP = max(8, ((B + 7) // 8) * 8)          # sublane-padded batch

    # Per-call glue is only contiguous (bitcast-level) reshapes; gather / weight packing /
    # time-major transposes all moved into the kernel or the one-time pack_params().
    ids_col = input_ids.reshape(B * T, 1).astype(jnp.int32)
    a_bm = A.reshape(B * T, A_DIM).astype(jnp.float32)

    kernel = functools.partial(_lstm_relation_kernel, batch=B, batch_pad=BP, seq=T)
    vmem = pl.BlockSpec(memory_space=pltpu.MemorySpace.VMEM)

    out_flat = pl.pallas_call(
        kernel,
        out_shape=jax.ShapeDtypeStruct((T * BP, R_PAD), jnp.float32),
        in_specs=[vmem, vmem, vmem],
        out_specs=vmem,
        scratch_shapes=[
            pltpu.VMEM((T, BP, FOUR_H), jnp.float32),   # time-major staged gates
            pltpu.VMEM((T, BP, H2), jnp.float32),       # collected hidden states
        ],
    )(ids_col, a_bm, slab)

    # Strip sublane/lane padding and return to the PyTorch (B, T, R) layout.
    out = out_flat.reshape(T, BP, R_PAD)
    return jnp.transpose(out[:, :B, :RELATION_SIZE], (1, 0, 2))


# ---------------------------- pure-JAX reference --------------------------------
def reference_forward(input_ids, A, params):
    emb = jnp.take(params["embedding"], input_ids, axis=0)
    x = jnp.concatenate([emb, A], axis=2)                               # (B, T, D_in)
    B, T, _ = x.shape
    wih, whh = params["w_ih"], params["w_hh"]
    b = params["b_ih"] + params["b_hh"]

    def cell(carry, xt):
        h, c = carry
        gates = xt @ wih.T + h @ whh.T + b
        i = jax.nn.sigmoid(gates[:, 0 * H2:1 * H2])
        f = jax.nn.sigmoid(gates[:, 1 * H2:2 * H2])
        g = jnp.tanh(gates[:, 2 * H2:3 * H2])
        o = jax.nn.sigmoid(gates[:, 3 * H2:4 * H2])
        c = f * c + i * g
        h = o * jnp.tanh(c)
        return (h, c), h

    h0 = jnp.zeros((B, H2), jnp.float32)
    c0 = jnp.zeros((B, H2), jnp.float32)
    _, hs = lax.scan(cell, (h0, c0), jnp.transpose(x, (1, 0, 2)))       # (T, B, H2)
    hs = jnp.transpose(hs, (1, 0, 2))                                   # (B, T, H2)
    return jax.nn.sigmoid(hs @ params["w_out"].T + params["b_out"])


# ---------------------------------- main ----------------------------------------
if __name__ == "__main__":
    key = jax.random.PRNGKey(0)
    keys = jax.random.split(key, 9)

    params = {
        "embedding": jax.random.normal(keys[0], (VOCAB_SIZE, EMB_SIZE), jnp.float32) * 0.1,
        "w_ih": jax.random.normal(keys[1], (4 * H2, D_IN), jnp.float32) * 0.1,
        "w_hh": jax.random.normal(keys[2], (4 * H2, H2), jnp.float32) * 0.1,
        "b_ih": jax.random.normal(keys[3], (4 * H2,), jnp.float32) * 0.1,
        "b_hh": jax.random.normal(keys[4], (4 * H2,), jnp.float32) * 0.1,
        "w_out": jax.random.normal(keys[5], (RELATION_SIZE, H2), jnp.float32) * 0.1,
        "b_out": jax.random.normal(keys[6], (RELATION_SIZE,), jnp.float32) * 0.1,
    }

    input_ids = jax.random.randint(keys[7], (BATCH, SEQ), 0, VOCAB_SIZE, dtype=jnp.int32)
    A = jax.random.normal(keys[8], (BATCH, SEQ, A_DIM), jnp.float32)

    # One-time weight packing (init-time, outside the per-call path).
    slab = jax.block_until_ready(pack_params(params))

    fwd = jax.jit(lstm_relation_block_forward)
    out = jax.block_until_ready(fwd(input_ids, A, slab))

    ref = jax.block_until_ready(reference_forward(input_ids, A, params))
    assert out.shape == (BATCH, SEQ, RELATION_SIZE)
    assert jnp.allclose(out, ref, atol=1e-5, rtol=1e-5), "mismatch vs pure-JAX reference"

    print("KERNEL_OK")
</pallas_src>

<mosaic_0001>
module attributes {stable_mosaic.version = 11 : i64} {
  func.func @_lstm_relation_kernel(%arg0: memref<16x1xi32, #tpu.memory_space<vmem>>, %arg1: memref<16x32xf32, #tpu.memory_space<vmem>>, %arg2: memref<240x128xf32, #tpu.memory_space<vmem>>, %arg3: memref<64x128xf32, #tpu.memory_space<vmem>>, %arg4: memref<8x8x128xf32, #tpu.memory_space<vmem>>, %arg5: memref<8x8x32xf32, #tpu.memory_space<vmem>>) attributes {dimension_semantics = [], scalar_prefetch = 0 : i64, scratch_operands = 2 : i64, tpu.core_type = #tpu.core_type<tc>} {
    %c0 = arith.constant 0 : index
    %c0_0 = arith.constant 0 : index
    %0 = vector.load %arg2[%c0, %c0_0] : memref<240x128xf32, #tpu.memory_space<vmem>>, vector<160x128xf32>
    %c160 = arith.constant 160 : index
    %c0_1 = arith.constant 0 : index
    %1 = vector.load %arg2[%c160, %c0_1] : memref<240x128xf32, #tpu.memory_space<vmem>>, vector<32x128xf32>
    %c192 = arith.constant 192 : index
    %c0_2 = arith.constant 0 : index
    %2 = vector.load %arg2[%c192, %c0_2] : memref<240x128xf32, #tpu.memory_space<vmem>>, vector<32x128xf32>
    %c224 = arith.constant 224 : index
    %c0_3 = arith.constant 0 : index
    %3 = vector.load %arg2[%c224, %c0_3] : memref<240x128xf32, #tpu.memory_space<vmem>>, vector<1x128xf32>
    %c232 = arith.constant 232 : index
    %c0_4 = arith.constant 0 : index
    %4 = vector.load %arg2[%c232, %c0_4] : memref<240x128xf32, #tpu.memory_space<vmem>>, vector<1x128xf32>
    %c0_5 = arith.constant 0 : index
    %c0_6 = arith.constant 0 : index
    %5 = vector.load %arg0[%c0_5, %c0_6] : memref<16x1xi32, #tpu.memory_space<vmem>>, vector<16x1xi32>
    %6 = tpu.iota {dimensions = array<i32: 1>} : vector<16x128xi32>
    %7 = vector.broadcast %5 : vector<16x1xi32> to vector<16x128xi32>
    %8 = arith.cmpi eq, %7, %6 : vector<16x128xi32>
    %9 = arith.extui %8 : vector<16x128xi1> to vector<16x128xi32>
    %10 = arith.sitofp %9 : vector<16x128xi32> to vector<16x128xf32>
    %c0_7 = arith.constant 0 : index
    %c0_8 = arith.constant 0 : index
    %11 = vector.load %arg1[%c0_7, %c0_8] : memref<16x32xf32, #tpu.memory_space<vmem>>, vector<16x32xf32>
    %12 = tpu.concatenate %10, %11 in 1 : vector<16x128xf32>, vector<16x32xf32> -> vector<16x160xf32>
    %cst = arith.constant dense<0.000000e+00> : vector<16x128xf32>
    %13 = tpu.matmul %12, %0, %cst {dimension_numbers = #tpu.dot_dimension_numbers<[1], [0], [0], [1], [0, 0, 1, 1], [], []>} : vector<16x160xf32>, vector<160x128xf32>, vector<16x128xf32> -> vector<16x128xf32>
    %14 = vector.broadcast %3 : vector<1x128xf32> to vector<16x128xf32>
    %15 = arith.addf %13, %14 : vector<16x128xf32>
    %cst_9 = arith.constant 0.000000e+00 : f32
    %16 = vector.broadcast %cst_9 : f32 to vector<6x128xf32>
    %17 = vector.extract_strided_slice %15 {offsets = [0, 0], sizes = [1, 128], strides = [1, 1]} : vector<16x128xf32> to vector<1x128xf32>
    %18 = vector.extract_strided_slice %15 {offsets = [8, 0], sizes = [1, 128], strides = [1, 1]} : vector<16x128xf32> to vector<1x128xf32>
    %19 = tpu.concatenate %17, %18, %16 in 0 : vector<1x128xf32>, vector<1x128xf32>, vector<6x128xf32> -> vector<8x128xf32>
    %c0_10 = arith.constant 0 : index
    %c0_11 = arith.constant 0 : index
    %c0_12 = arith.constant 0 : index
    %20 = vector.load %arg4[%c0_10, %c0_11, %c0_12] : memref<8x8x128xf32, #tpu.memory_space<vmem>>, vector<1x8x128xf32>
    %21 = vector.shape_cast %20 : vector<1x8x128xf32> to vector<8x128xf32>
    %22 = vector.shape_cast %19 : vector<8x128xf32> to vector<1x8x128xf32>
    tpu.vector_store %arg4[%c0_10, %c0_11, %c0_12], %22 {strides = array<i32>} : memref<8x8x128xf32, #tpu.memory_space<vmem>>, vector<1x8x128xf32>,
    %23 = vector.extract_strided_slice %15 {offsets = [1, 0], sizes = [1, 128], strides = [1, 1]} : vector<16x128xf32> to vector<1x128xf32>
    %24 = vector.extract_strided_slice %15 {offsets = [9, 0], sizes = [1, 128], strides = [1, 1]} : vector<16x128xf32> to vector<1x128xf32>
    %25 = tpu.concatenate %23, %24, %16 in 0 : vector<1x128xf32>, vector<1x128xf32>, vector<6x128xf32> -> vector<8x128xf32>
    %c1 = arith.constant 1 : index
    %c0_13 = arith.constant 0 : index
    %c0_14 = arith.constant 0 : index
    %26 = vector.load %arg4[%c1, %c0_13, %c0_14] : memref<8x8x128xf32, #tpu.memory_space<vmem>>, vector<1x8x128xf32>
    %27 = vector.shape_cast %26 : vector<1x8x128xf32> to vector<8x128xf32>
    %28 = vector.shape_cast %25 : vector<8x128xf32> to vector<1x8x128xf32>
    tpu.vector_store %arg4[%c1, %c0_13, %c0_14], %28 {strides = array<i32>} : memref<8x8x128xf32, #tpu.memory_space<vmem>>, vector<1x8x128xf32>,
    %29 = vector.extract_strided_slice %15 {offsets = [2, 0], sizes = [1, 128], strides = [1, 1]} : vector<16x128xf32> to vector<1x128xf32>
    %30 = vector.extract_strided_slice %15 {offsets = [10, 0], sizes = [1, 128], strides = [1, 1]} : vector<16x128xf32> to vector<1x128xf32>
    %31 = tpu.concatenate %29, %30, %16 in 0 : vector<1x128xf32>, vector<1x128xf32>, vector<6x128xf32> -> vector<8x128xf32>
    %c2 = arith.constant 2 : index
    %c0_15 = arith.constant 0 : index
    %c0_16 = arith.constant 0 : index
    %32 = vector.load %arg4[%c2, %c0_15, %c0_16] : memref<8x8x128xf32, #tpu.memory_space<vmem>>, vector<1x8x128xf32>
    %33 = vector.shape_cast %32 : vector<1x8x128xf32> to vector<8x128xf32>
    %34 = vector.shape_cast %31 : vector<8x128xf32> to vector<1x8x128xf32>
    tpu.vector_store %arg4[%c2, %c0_15, %c0_16], %34 {strides = array<i32>} : memref<8x8x128xf32, #tpu.memory_space<vmem>>, vector<1x8x128xf32>,
    %35 = vector.extract_strided_slice %15 {offsets = [3, 0], sizes = [1, 128], strides = [1, 1]} : vector<16x128xf32> to vector<1x128xf32>
    %36 = vector.extract_strided_slice %15 {offsets = [11, 0], sizes = [1, 128], strides = [1, 1]} : vector<16x128xf32> to vector<1x128xf32>
    %37 = tpu.concatenate %35, %36, %16 in 0 : vector<1x128xf32>, vector<1x128xf32>, vector<6x128xf32> -> vector<8x128xf32>
    %c3 = arith.constant 3 : index
    %c0_17 = arith.constant 0 : index
    %c0_18 = arith.constant 0 : index
    %38 = vector.load %arg4[%c3, %c0_17, %c0_18] : memref<8x8x128xf32, #tpu.memory_space<vmem>>, vector<1x8x128xf32>
    %39 = vector.shape_cast %38 : vector<1x8x128xf32> to vector<8x128xf32>
    %40 = vector.shape_cast %37 : vector<8x128xf32> to vector<1x8x128xf32>
    tpu.vector_store %arg4[%c3, %c0_17, %c0_18], %40 {strides = array<i32>} : memref<8x8x128xf32, #tpu.memory_space<vmem>>, vector<1x8x128xf32>,
    %41 = vector.extract_strided_slice %15 {offsets = [4, 0], sizes = [1, 128], strides = [1, 1]} : vector<16x128xf32> to vector<1x128xf32>
    %42 = vector.extract_strided_slice %15 {offsets = [12, 0], sizes = [1, 128], strides = [1, 1]} : vector<16x128xf32> to vector<1x128xf32>
    %43 = tpu.concatenate %41, %42, %16 in 0 : vector<1x128xf32>, vector<1x128xf32>, vector<6x128xf32> -> vector<8x128xf32>
    %c4 = arith.constant 4 : index
    %c0_19 = arith.constant 0 : index
    %c0_20 = arith.constant 0 : index
    %44 = vector.load %arg4[%c4, %c0_19, %c0_20] : memref<8x8x128xf32, #tpu.memory_space<vmem>>, vector<1x8x128xf32>
    %45 = vector.shape_cast %44 : vector<1x8x128xf32> to vector<8x128xf32>
    %46 = vector.shape_cast %43 : vector<8x128xf32> to vector<1x8x128xf32>
    tpu.vector_store %arg4[%c4, %c0_19, %c0_20], %46 {strides = array<i32>} : memref<8x8x128xf32, #tpu.memory_space<vmem>>, vector<1x8x128xf32>,
    %47 = vector.extract_strided_slice %15 {offsets = [5, 0], sizes = [1, 128], strides = [1, 1]} : vector<16x128xf32> to vector<1x128xf32>
    %48 = vector.extract_strided_slice %15 {offsets = [13, 0], sizes = [1, 128], strides = [1, 1]} : vector<16x128xf32> to vector<1x128xf32>
    %49 = tpu.concatenate %47, %48, %16 in 0 : vector<1x128xf32>, vector<1x128xf32>, vector<6x128xf32> -> vector<8x128xf32>
    %c5 = arith.constant 5 : index
    %c0_21 = arith.constant 0 : index
    %c0_22 = arith.constant 0 : index
    %50 = vector.load %arg4[%c5, %c0_21, %c0_22] : memref<8x8x128xf32, #tpu.memory_space<vmem>>, vector<1x8x128xf32>
    %51 = vector.shape_cast %50 : vector<1x8x128xf32> to vector<8x128xf32>
    %52 = vector.shape_cast %49 : vector<8x128xf32> to vector<1x8x128xf32>
    tpu.vector_store %arg4[%c5, %c0_21, %c0_22], %52 {strides = array<i32>} : memref<8x8x128xf32, #tpu.memory_space<vmem>>, vector<1x8x128xf32>,
    %53 = vector.extract_strided_slice %15 {offsets = [6, 0], sizes = [1, 128], strides = [1, 1]} : vector<16x128xf32> to vector<1x128xf32>
    %54 = vector.extract_strided_slice %15 {offsets = [14, 0], sizes = [1, 128], strides = [1, 1]} : vector<16x128xf32> to vector<1x128xf32>
    %55 = tpu.concatenate %53, %54, %16 in 0 : vector<1x128xf32>, vector<1x128xf32>, vector<6x128xf32> -> vector<8x128xf32>
    %c6 = arith.constant 6 : index
    %c0_23 = arith.constant 0 : index
    %c0_24 = arith.constant 0 : index
    %56 = vector.load %arg4[%c6, %c0_23, %c0_24] : memref<8x8x128xf32, #tpu.memory_space<vmem>>, vector<1x8x128xf32>
    %57 = vector.shape_cast %56 : vector<1x8x128xf32> to vector<8x128xf32>
    %58 = vector.shape_cast %55 : vector<8x128xf32> to vector<1x8x128xf32>
    tpu.vector_store %arg4[%c6, %c0_23, %c0_24], %58 {strides = array<i32>} : memref<8x8x128xf32, #tpu.memory_space<vmem>>, vector<1x8x128xf32>,
    %59 = vector.extract_strided_slice %15 {offsets = [7, 0], sizes = [1, 128], strides = [1, 1]} : vector<16x128xf32> to vector<1x128xf32>
    %60 = vector.extract_strided_slice %15 {offsets = [15, 0], sizes = [1, 128], strides = [1, 1]} : vector<16x128xf32> to vector<1x128xf32>
    %61 = tpu.concatenate %59, %60, %16 in 0 : vector<1x128xf32>, vector<1x128xf32>, vector<6x128xf32> -> vector<8x128xf32>
    %c7 = arith.constant 7 : index
    %c0_25 = arith.constant 0 : index
    %c0_26 = arith.constant 0 : index
    %62 = vector.load %arg4[%c7, %c0_25, %c0_26] : memref<8x8x128xf32, #tpu.memory_space<vmem>>, vector<1x8x128xf32>
    %63 = vector.shape_cast %62 : vector<1x8x128xf32> to vector<8x128xf32>
    %64 = vector.shape_cast %61 : vector<8x128xf32> to vector<1x8x128xf32>
    tpu.vector_store %arg4[%c7, %c0_25, %c0_26], %64 {strides = array<i32>} : memref<8x8x128xf32, #tpu.memory_space<vmem>>, vector<1x8x128xf32>,
    %cst_27 = arith.constant 0.000000e+00 : f32
    %65 = vector.broadcast %cst_27 : f32 to vector<8x32xf32>
    %cst_28 = arith.constant 0.000000e+00 : f32
    %66 = vector.broadcast %cst_28 : f32 to vector<8x32xf32>
    %c0_29 = arith.constant 0 : index
    %c0_30 = arith.constant 0 : index
    %c0_31 = arith.constant 0 : index
    %67 = vector.load %arg4[%c0_29, %c0_30, %c0_31] : memref<8x8x128xf32, #tpu.memory_space<vmem>>, vector<1x8x128xf32>
    %68 = vector.shape_cast %67 : vector<1x8x128xf32> to vector<8x128xf32>
    %cst_32 = arith.constant dense<0.000000e+00> : vector<8x128xf32>
    %69 = tpu.matmul %65, %1, %cst_32 {dimension_numbers = #tpu.dot_dimension_numbers<[1], [0], [0], [1], [0, 0, 1, 1], [], []>} : vector<8x32xf32>, vector<32x128xf32>, vector<8x128xf32> -> vector<8x128xf32>
    %70 = arith.addf %68, %69 : vector<8x128xf32>
    %71 = arith.negf %70 : vector<8x128xf32>
    %72 = math.exp %71 : vector<8x128xf32>
    %cst_33 = arith.constant 1.000000e+00 : f32
    %73 = vector.broadcast %cst_33 : f32 to vector<8x128xf32>
    %74 = arith.addf %73, %72 : vector<8x128xf32>
    %75 = arith.divf %73, %74 : vector<8x128xf32>
    %76 = math.tanh %70 : vector<8x128xf32>
    %77 = vector.extract_strided_slice %75 {offsets = [0, 0], sizes = [8, 32], strides = [1, 1]} : vector<8x128xf32> to vector<8x32xf32>
    %78 = vector.extract_strided_slice %75 {offsets = [0, 32], sizes = [8, 32], strides = [1, 1]} : vector<8x128xf32> to vector<8x32xf32>
    %79 = vector.extract_strided_slice %76 {offsets = [0, 64], sizes = [8, 32], strides = [1, 1]} : vector<8x128xf32> to vector<8x32xf32>
    %80 = vector.extract_strided_slice %75 {offsets = [0, 96], sizes = [8, 32], strides = [1, 1]} : vector<8x128xf32> to vector<8x32xf32>
    %81 = arith.mulf %78, %66 : vector<8x32xf32>
    %82 = arith.mulf %77, %79 : vector<8x32xf32>
    %83 = arith.addf %81, %82 : vector<8x32xf32>
    %84 = math.tanh %83 : vector<8x32xf32>
    %85 = arith.mulf %80, %84 : vector<8x32xf32>
    %c0_34 = arith.constant 0 : index
    %c0_35 = arith.constant 0 : index
    %c0_36 = arith.constant 0 : index
    %86 = vector.load %arg5[%c0_34, %c0_35, %c0_36] : memref<8x8x32xf32, #tpu.memory_space<vmem>>, vector<1x8x32xf32>
    %87 = vector.shape_cast %86 : vector<1x8x32xf32> to vector<8x32xf32>
    %88 = vector.shape_cast %85 : vector<8x32xf32> to vector<1x8x32xf32>
    tpu.vector_store %arg5[%c0_34, %c0_35, %c0_36], %88 {strides = array<i32>} : memref<8x8x32xf32, #tpu.memory_space<vmem>>, vector<1x8x32xf32>,
    %c1_37 = arith.constant 1 : index
    %c0_38 = arith.constant 0 : index
    %c0_39 = arith.constant 0 : index
    %89 = vector.load %arg4[%c1_37, %c0_38, %c0_39] : memref<8x8x128xf32, #tpu.memory_space<vmem>>, vector<1x8x128xf32>
    %90 = vector.shape_cast %89 : vector<1x8x128xf32> to vector<8x128xf32>
    %cst_40 = arith.constant dense<0.000000e+00> : vector<8x128xf32>
    %91 = tpu.matmul %85, %1, %cst_40 {dimension_numbers = #tpu.dot_dimension_numbers<[1], [0], [0], [1], [0, 0, 1, 1], [], []>} : vector<8x32xf32>, vector<32x128xf32>, vector<8x128xf32> -> vector<8x128xf32>
    %92 = arith.addf %90, %91 : vector<8x128xf32>
    %93 = arith.negf %92 : vector<8x128xf32>
    %94 = math.exp %93 : vector<8x128xf32>
    %cst_41 = arith.constant 1.000000e+00 : f32
    %95 = vector.broadcast %cst_41 : f32 to vector<8x128xf32>
    %96 = arith.addf %95, %94 : vector<8x128xf32>
    %97 = arith.divf %95, %96 : vector<8x128xf32>
    %98 = math.tanh %92 : vector<8x128xf32>
    %99 = vector.extract_strided_slice %97 {offsets = [0, 0], sizes = [8, 32], strides = [1, 1]} : vector<8x128xf32> to vector<8x32xf32>
    %100 = vector.extract_strided_slice %97 {offsets = [0, 32], sizes = [8, 32], strides = [1, 1]} : vector<8x128xf32> to vector<8x32xf32>
    %101 = vector.extract_strided_slice %98 {offsets = [0, 64], sizes = [8, 32], strides = [1, 1]} : vector<8x128xf32> to vector<8x32xf32>
    %102 = vector.extract_strided_slice %97 {offsets = [0, 96], sizes = [8, 32], strides = [1, 1]} : vector<8x128xf32> to vector<8x32xf32>
    %103 = arith.mulf %100, %83 : vector<8x32xf32>
    %104 = arith.mulf %99, %101 : vector<8x32xf32>
    %105 = arith.addf %103, %104 : vector<8x32xf32>
    %106 = math.tanh %105 : vector<8x32xf32>
    %107 = arith.mulf %102, %106 : vector<8x32xf32>
    %c1_42 = arith.constant 1 : index
    %c0_43 = arith.constant 0 : index
    %c0_44 = arith.constant 0 : index
    %108 = vector.load %arg5[%c1_42, %c0_43, %c0_44] : memref<8x8x32xf32, #tpu.memory_space<vmem>>, vector<1x8x32xf32>
    %109 = vector.shape_cast %108 : vector<1x8x32xf32> to vector<8x32xf32>
    %110 = vector.shape_cast %107 : vector<8x32xf32> to vector<1x8x32xf32>
    tpu.vector_store %arg5[%c1_42, %c0_43, %c0_44], %110 {strides = array<i32>} : memref<8x8x32xf32, #tpu.memory_space<vmem>>, vector<1x8x32xf32>,
    %c2_45 = arith.constant 2 : index
    %c0_46 = arith.constant 0 : index
    %c0_47 = arith.constant 0 : index
    %111 = vector.load %arg4[%c2_45, %c0_46, %c0_47] : memref<8x8x128xf32, #tpu.memory_space<vmem>>, vector<1x8x128xf32>
    %112 = vector.shape_cast %111 : vector<1x8x128xf32> to vector<8x128xf32>
    %cst_48 = arith.constant dense<0.000000e+00> : vector<8x128xf32>
    %113 = tpu.matmul %107, %1, %cst_48 {dimension_numbers = #tpu.dot_dimension_numbers<[1], [0], [0], [1], [0, 0, 1, 1], [], []>} : vector<8x32xf32>, vector<32x128xf32>, vector<8x128xf32> -> vector<8x128xf32>
    %114 = arith.addf %112, %113 : vector<8x128xf32>
    %115 = arith.negf %114 : vector<8x128xf32>
    %116 = math.exp %115 : vector<8x128xf32>
    %cst_49 = arith.constant 1.000000e+00 : f32
    %117 = vector.broadcast %cst_49 : f32 to vector<8x128xf32>
    %118 = arith.addf %117, %116 : vector<8x128xf32>
    %119 = arith.divf %117, %118 : vector<8x128xf32>
    %120 = math.tanh %114 : vector<8x128xf32>
    %121 = vector.extract_strided_slice %119 {offsets = [0, 0], sizes = [8, 32], strides = [1, 1]} : vector<8x128xf32> to vector<8x32xf32>
    %122 = vector.extract_strided_slice %119 {offsets = [0, 32], sizes = [8, 32], strides = [1, 1]} : vector<8x128xf32> to vector<8x32xf32>
    %123 = vector.extract_strided_slice %120 {offsets = [0, 64], sizes = [8, 32], strides = [1, 1]} : vector<8x128xf32> to vector<8x32xf32>
    %124 = vector.extract_strided_slice %119 {offsets = [0, 96], sizes = [8, 32], strides = [1, 1]} : vector<8x128xf32> to vector<8x32xf32>
    %125 = arith.mulf %122, %105 : vector<8x32xf32>
    %126 = arith.mulf %121, %123 : vector<8x32xf32>
    %127 = arith.addf %125, %126 : vector<8x32xf32>
    %128 = math.tanh %127 : vector<8x32xf32>
    %129 = arith.mulf %124, %128 : vector<8x32xf32>
    %c2_50 = arith.constant 2 : index
    %c0_51 = arith.constant 0 : index
    %c0_52 = arith.constant 0 : index
    %130 = vector.load %arg5[%c2_50, %c0_51, %c0_52] : memref<8x8x32xf32, #tpu.memory_space<vmem>>, vector<1x8x32xf32>
    %131 = vector.shape_cast %130 : vector<1x8x32xf32> to vector<8x32xf32>
    %132 = vector.shape_cast %129 : vector<8x32xf32> to vector<1x8x32xf32>
    tpu.vector_store %arg5[%c2_50, %c0_51, %c0_52], %132 {strides = array<i32>} : memref<8x8x32xf32, #tpu.memory_space<vmem>>, vector<1x8x32xf32>,
    %c3_53 = arith.constant 3 : index
    %c0_54 = arith.constant 0 : index
    %c0_55 = arith.constant 0 : index
    %133 = vector.load %arg4[%c3_53, %c0_54, %c0_55] : memref<8x8x128xf32, #tpu.memory_space<vmem>>, vector<1x8x128xf32>
    %134 = vector.shape_cast %133 : vector<1x8x128xf32> to vector<8x128xf32>
    %cst_56 = arith.constant dense<0.000000e+00> : vector<8x128xf32>
    %135 = tpu.matmul %129, %1, %cst_56 {dimension_numbers = #tpu.dot_dimension_numbers<[1], [0], [0], [1], [0, 0, 1, 1], [], []>} : vector<8x32xf32>, vector<32x128xf32>, vector<8x128xf32> -> vector<8x128xf32>
    %136 = arith.addf %134, %135 : vector<8x128xf32>
    %137 = arith.negf %136 : vector<8x128xf32>
    %138 = math.exp %137 : vector<8x128xf32>
    %cst_57 = arith.constant 1.000000e+00 : f32
    %139 = vector.broadcast %cst_57 : f32 to vector<8x128xf32>
    %140 = arith.addf %139, %138 : vector<8x128xf32>
    %141 = arith.divf %139, %140 : vector<8x128xf32>
    %142 = math.tanh %136 : vector<8x128xf32>
    %143 = vector.extract_strided_slice %141 {offsets = [0, 0], sizes = [8, 32], strides = [1, 1]} : vector<8x128xf32> to vector<8x32xf32>
    %144 = vector.extract_strided_slice %141 {offsets = [0, 32], sizes = [8, 32], strides = [1, 1]} : vector<8x128xf32> to vector<8x32xf32>
    %145 = vector.extract_strided_slice %142 {offsets = [0, 64], sizes = [8, 32], strides = [1, 1]} : vector<8x128xf32> to vector<8x32xf32>
    %146 = vector.extract_strided_slice %141 {offsets = [0, 96], sizes = [8, 32], strides = [1, 1]} : vector<8x128xf32> to vector<8x32xf32>
    %147 = arith.mulf %144, %127 : vector<8x32xf32>
    %148 = arith.mulf %143, %145 : vector<8x32xf32>
    %149 = arith.addf %147, %148 : vector<8x32xf32>
    %150 = math.tanh %149 : vector<8x32xf32>
    %151 = arith.mulf %146, %150 : vector<8x32xf32>
    %c3_58 = arith.constant 3 : index
    %c0_59 = arith.constant 0 : index
    %c0_60 = arith.constant 0 : index
    %152 = vector.load %arg5[%c3_58, %c0_59, %c0_60] : memref<8x8x32xf32, #tpu.memory_space<vmem>>, vector<1x8x32xf32>
    %153 = vector.shape_cast %152 : vector<1x8x32xf32> to vector<8x32xf32>
    %154 = vector.shape_cast %151 : vector<8x32xf32> to vector<1x8x32xf32>
    tpu.vector_store %arg5[%c3_58, %c0_59, %c0_60], %154 {strides = array<i32>} : memref<8x8x32xf32, #tpu.memory_space<vmem>>, vector<1x8x32xf32>,
    %c4_61 = arith.constant 4 : index
    %c0_62 = arith.constant 0 : index
    %c0_63 = arith.constant 0 : index
    %155 = vector.load %arg4[%c4_61, %c0_62, %c0_63] : memref<8x8x128xf32, #tpu.memory_space<vmem>>, vector<1x8x128xf32>
    %156 = vector.shape_cast %155 : vector<1x8x128xf32> to vector<8x128xf32>
    %cst_64 = arith.constant dense<0.000000e+00> : vector<8x128xf32>
    %157 = tpu.matmul %151, %1, %cst_64 {dimension_numbers = #tpu.dot_dimension_numbers<[1], [0], [0], [1], [0, 0, 1, 1], [], []>} : vector<8x32xf32>, vector<32x128xf32>, vector<8x128xf32> -> vector<8x128xf32>
    %158 = arith.addf %156, %157 : vector<8x128xf32>
    %159 = arith.negf %158 : vector<8x128xf32>
    %160 = math.exp %159 : vector<8x128xf32>
    %cst_65 = arith.constant 1.000000e+00 : f32
    %161 = vector.broadcast %cst_65 : f32 to vector<8x128xf32>
    %162 = arith.addf %161, %160 : vector<8x128xf32>
    %163 = arith.divf %161, %162 : vector<8x128xf32>
    %164 = math.tanh %158 : vector<8x128xf32>
    %165 = vector.extract_strided_slice %163 {offsets = [0, 0], sizes = [8, 32], strides = [1, 1]} : vector<8x128xf32> to vector<8x32xf32>
    %166 = vector.extract_strided_slice %163 {offsets = [0, 32], sizes = [8, 32], strides = [1, 1]} : vector<8x128xf32> to vector<8x32xf32>
    %167 = vector.extract_strided_slice %164 {offsets = [0, 64], sizes = [8, 32], strides = [1, 1]} : vector<8x128xf32> to vector<8x32xf32>
    %168 = vector.extract_strided_slice %163 {offsets = [0, 96], sizes = [8, 32], strides = [1, 1]} : vector<8x128xf32> to vector<8x32xf32>
    %169 = arith.mulf %166, %149 : vector<8x32xf32>
    %170 = arith.mulf %165, %167 : vector<8x32xf32>
    %171 = arith.addf %169, %170 : vector<8x32xf32>
    %172 = math.tanh %171 : vector<8x32xf32>
    %173 = arith.mulf %168, %172 : vector<8x32xf32>
    %c4_66 = arith.constant 4 : index
    %c0_67 = arith.constant 0 : index
    %c0_68 = arith.constant 0 : index
    %174 = vector.load %arg5[%c4_66, %c0_67, %c0_68] : memref<8x8x32xf32, #tpu.memory_space<vmem>>, vector<1x8x32xf32>
    %175 = vector.shape_cast %174 : vector<1x8x32xf32> to vector<8x32xf32>
    %176 = vector.shape_cast %173 : vector<8x32xf32> to vector<1x8x32xf32>
    tpu.vector_store %arg5[%c4_66, %c0_67, %c0_68], %176 {strides = array<i32>} : memref<8x8x32xf32, #tpu.memory_space<vmem>>, vector<1x8x32xf32>,
    %c5_69 = arith.constant 5 : index
    %c0_70 = arith.constant 0 : index
    %c0_71 = arith.constant 0 : index
    %177 = vector.load %arg4[%c5_69, %c0_70, %c0_71] : memref<8x8x128xf32, #tpu.memory_space<vmem>>, vector<1x8x128xf32>
    %178 = vector.shape_cast %177 : vector<1x8x128xf32> to vector<8x128xf32>
    %cst_72 = arith.constant dense<0.000000e+00> : vector<8x128xf32>
    %179 = tpu.matmul %173, %1, %cst_72 {dimension_numbers = #tpu.dot_dimension_numbers<[1], [0], [0], [1], [0, 0, 1, 1], [], []>} : vector<8x32xf32>, vector<32x128xf32>, vector<8x128xf32> -> vector<8x128xf32>
    %180 = arith.addf %178, %179 : vector<8x128xf32>
    %181 = arith.negf %180 : vector<8x128xf32>
    %182 = math.exp %181 : vector<8x128xf32>
    %cst_73 = arith.constant 1.000000e+00 : f32
    %183 = vector.broadcast %cst_73 : f32 to vector<8x128xf32>
    %184 = arith.addf %183, %182 : vector<8x128xf32>
    %185 = arith.divf %183, %184 : vector<8x128xf32>
    %186 = math.tanh %180 : vector<8x128xf32>
    %187 = vector.extract_strided_slice %185 {offsets = [0, 0], sizes = [8, 32], strides = [1, 1]} : vector<8x128xf32> to vector<8x32xf32>
    %188 = vector.extract_strided_slice %185 {offsets = [0, 32], sizes = [8, 32], strides = [1, 1]} : vector<8x128xf32> to vector<8x32xf32>
    %189 = vector.extract_strided_slice %186 {offsets = [0, 64], sizes = [8, 32], strides = [1, 1]} : vector<8x128xf32> to vector<8x32xf32>
    %190 = vector.extract_strided_slice %185 {offsets = [0, 96], sizes = [8, 32], strides = [1, 1]} : vector<8x128xf32> to vector<8x32xf32>
    %191 = arith.mulf %188, %171 : vector<8x32xf32>
    %192 = arith.mulf %187, %189 : vector<8x32xf32>
    %193 = arith.addf %191, %192 : vector<8x32xf32>
    %194 = math.tanh %193 : vector<8x32xf32>
    %195 = arith.mulf %190, %194 : vector<8x32xf32>
    %c5_74 = arith.constant 5 : index
    %c0_75 = arith.constant 0 : index
    %c0_76 = arith.constant 0 : index
    %196 = vector.load %arg5[%c5_74, %c0_75, %c0_76] : memref<8x8x32xf32, #tpu.memory_space<vmem>>, vector<1x8x32xf32>
    %197 = vector.shape_cast %196 : vector<1x8x32xf32> to vector<8x32xf32>
    %198 = vector.shape_cast %195 : vector<8x32xf32> to vector<1x8x32xf32>
    tpu.vector_store %arg5[%c5_74, %c0_75, %c0_76], %198 {strides = array<i32>} : memref<8x8x32xf32, #tpu.memory_space<vmem>>, vector<1x8x32xf32>,
    %c6_77 = arith.constant 6 : index
    %c0_78 = arith.constant 0 : index
    %c0_79 = arith.constant 0 : index
    %199 = vector.load %arg4[%c6_77, %c0_78, %c0_79] : memref<8x8x128xf32, #tpu.memory_space<vmem>>, vector<1x8x128xf32>
    %200 = vector.shape_cast %199 : vector<1x8x128xf32> to vector<8x128xf32>
    %cst_80 = arith.constant dense<0.000000e+00> : vector<8x128xf32>
    %201 = tpu.matmul %195, %1, %cst_80 {dimension_numbers = #tpu.dot_dimension_numbers<[1], [0], [0], [1], [0, 0, 1, 1], [], []>} : vector<8x32xf32>, vector<32x128xf32>, vector<8x128xf32> -> vector<8x128xf32>
    %202 = arith.addf %200, %201 : vector<8x128xf32>
    %203 = arith.negf %202 : vector<8x128xf32>
    %204 = math.exp %203 : vector<8x128xf32>
    %cst_81 = arith.constant 1.000000e+00 : f32
    %205 = vector.broadcast %cst_81 : f32 to vector<8x128xf32>
    %206 = arith.addf %205, %204 : vector<8x128xf32>
    %207 = arith.divf %205, %206 : vector<8x128xf32>
    %208 = math.tanh %202 : vector<8x128xf32>
    %209 = vector.extract_strided_slice %207 {offsets = [0, 0], sizes = [8, 32], strides = [1, 1]} : vector<8x128xf32> to vector<8x32xf32>
    %210 = vector.extract_strided_slice %207 {offsets = [0, 32], sizes = [8, 32], strides = [1, 1]} : vector<8x128xf32> to vector<8x32xf32>
    %211 = vector.extract_strided_slice %208 {offsets = [0, 64], sizes = [8, 32], strides = [1, 1]} : vector<8x128xf32> to vector<8x32xf32>
    %212 = vector.extract_strided_slice %207 {offsets = [0, 96], sizes = [8, 32], strides = [1, 1]} : vector<8x128xf32> to vector<8x32xf32>
    %213 = arith.mulf %210, %193 : vector<8x32xf32>
    %214 = arith.mulf %209, %211 : vector<8x32xf32>
    %215 = arith.addf %213, %214 : vector<8x32xf32>
    %216 = math.tanh %215 : vector<8x32xf32>
    %217 = arith.mulf %212, %216 : vector<8x32xf32>
    %c6_82 = arith.constant 6 : index
    %c0_83 = arith.constant 0 : index
    %c0_84 = arith.constant 0 : index
    %218 = vector.load %arg5[%c6_82, %c0_83, %c0_84] : memref<8x8x32xf32, #tpu.memory_space<vmem>>, vector<1x8x32xf32>
    %219 = vector.shape_cast %218 : vector<1x8x32xf32> to vector<8x32xf32>
    %220 = vector.shape_cast %217 : vector<8x32xf32> to vector<1x8x32xf32>
    tpu.vector_store %arg5[%c6_82, %c0_83, %c0_84], %220 {strides = array<i32>} : memref<8x8x32xf32, #tpu.memory_space<vmem>>, vector<1x8x32xf32>,
    %c7_85 = arith.constant 7 : index
    %c0_86 = arith.constant 0 : index
    %c0_87 = arith.constant 0 : index
    %221 = vector.load %arg4[%c7_85, %c0_86, %c0_87] : memref<8x8x128xf32, #tpu.memory_space<vmem>>, vector<1x8x128xf32>
    %222 = vector.shape_cast %221 : vector<1x8x128xf32> to vector<8x128xf32>
    %cst_88 = arith.constant dense<0.000000e+00> : vector<8x128xf32>
    %223 = tpu.matmul %217, %1, %cst_88 {dimension_numbers = #tpu.dot_dimension_numbers<[1], [0], [0], [1], [0, 0, 1, 1], [], []>} : vector<8x32xf32>, vector<32x128xf32>, vector<8x128xf32> -> vector<8x128xf32>
    %224 = arith.addf %222, %223 : vector<8x128xf32>
    %225 = arith.negf %224 : vector<8x128xf32>
    %226 = math.exp %225 : vector<8x128xf32>
    %cst_89 = arith.constant 1.000000e+00 : f32
    %227 = vector.broadcast %cst_89 : f32 to vector<8x128xf32>
    %228 = arith.addf %227, %226 : vector<8x128xf32>
    %229 = arith.divf %227, %228 : vector<8x128xf32>
    %230 = math.tanh %224 : vector<8x128xf32>
    %231 = vector.extract_strided_slice %229 {offsets = [0, 0], sizes = [8, 32], strides = [1, 1]} : vector<8x128xf32> to vector<8x32xf32>
    %232 = vector.extract_strided_slice %229 {offsets = [0, 32], sizes = [8, 32], strides = [1, 1]} : vector<8x128xf32> to vector<8x32xf32>
    %233 = vector.extract_strided_slice %230 {offsets = [0, 64], sizes = [8, 32], strides = [1, 1]} : vector<8x128xf32> to vector<8x32xf32>
    %234 = vector.extract_strided_slice %229 {offsets = [0, 96], sizes = [8, 32], strides = [1, 1]} : vector<8x128xf32> to vector<8x32xf32>
    %235 = arith.mulf %232, %215 : vector<8x32xf32>
    %236 = arith.mulf %231, %233 : vector<8x32xf32>
    %237 = arith.addf %235, %236 : vector<8x32xf32>
    %238 = math.tanh %237 : vector<8x32xf32>
    %239 = arith.mulf %234, %238 : vector<8x32xf32>
    %c7_90 = arith.constant 7 : index
    %c0_91 = arith.constant 0 : index
    %c0_92 = arith.constant 0 : index
    %240 = vector.load %arg5[%c7_90, %c0_91, %c0_92] : memref<8x8x32xf32, #tpu.memory_space<vmem>>, vector<1x8x32xf32>
    %241 = vector.shape_cast %240 : vector<1x8x32xf32> to vector<8x32xf32>
    %242 = vector.shape_cast %239 : vector<8x32xf32> to vector<1x8x32xf32>
    tpu.vector_store %arg5[%c7_90, %c0_91, %c0_92], %242 {strides = array<i32>} : memref<8x8x32xf32, #tpu.memory_space<vmem>>, vector<1x8x32xf32>,
    %c0_93 = arith.constant 0 : index
    %c0_94 = arith.constant 0 : index
    %c0_95 = arith.constant 0 : index
    %243 = vector.load %arg5[%c0_93, %c0_94, %c0_95] : memref<8x8x32xf32, #tpu.memory_space<vmem>>, vector<8x8x32xf32>
    %244 = vector.shape_cast %243 : vector<8x8x32xf32> to vector<64x32xf32>
    %cst_96 = arith.constant dense<0.000000e+00> : vector<64x128xf32>
    %245 = tpu.matmul %244, %2, %cst_96 {dimension_numbers = #tpu.dot_dimension_numbers<[1], [0], [0], [1], [0, 0, 1, 1], [], []>} : vector<64x32xf32>, vector<32x128xf32>, vector<64x128xf32> -> vector<64x128xf32>
    %246 = vector.broadcast %4 : vector<1x128xf32> to vector<64x128xf32>
    %247 = arith.addf %245, %246 : vector<64x128xf32>
    %248 = arith.negf %247 : vector<64x128xf32>
    %249 = math.exp %248 : vector<64x128xf32>
    %cst_97 = arith.constant 1.000000e+00 : f32
    %250 = vector.broadcast %cst_97 : f32 to vector<64x128xf32>
    %251 = arith.addf %250, %249 : vector<64x128xf32>
    %252 = arith.divf %250, %251 : vector<64x128xf32>
    %c0_98 = arith.constant 0 : index
    %c0_99 = arith.constant 0 : index
    %253 = vector.load %arg3[%c0_98, %c0_99] : memref<64x128xf32, #tpu.memory_space<vmem>>, vector<64x128xf32>
    tpu.vector_store %arg3[%c0_98, %c0_99], %252 {strides = array<i32>} : memref<64x128xf32, #tpu.memory_space<vmem>>, vector<64x128xf32>,
    return
  }
}

</mosaic_0001>

<bundles_post_ra>
// kernel: lstm_relation_block_forward.1
= control target key start
LH: loop header
LB: loop body
LE: loop exit
PB: predicated region body
PF: predicated region fallthrough
CT: control target
= control target key end

     0   :  { %8 = vsyncpa [#allocation5], 0  ;;  %s1148_s15 = smov [#allocation4]   ;;  %s1149_s17 = smov 128   ;;  %s1375_s0 = inlined_call_operand.vmem [shape: s32[16,1], index: 0, kind: input, shape index: {}]   ;;  %s1376_s1 = inlined_call_operand.vmem [shape: f32[16,32], index: 1, kind: input, shape index: {}]   ;;  %s1377_s2 = inlined_call_operand.hbm [shape: f32[240,128], index: 2, kind: input, shape index: {}]   ;;  %s1378_s3 = inlined_call_operand.vmem [shape: f32[64,128], index: 3, kind: output, shape index: {}]  }
   0x1   :  { %s17_s14 = sshll.u32 %s1377_s2, 4  ;;  %s19_s16 = sshll.u32 %s1148_s15, 4  ;;  %s18_s14 = int_to_ptr.hbm [resolvable:$true] %s17_s14  ;;  %s20_s16 = int_to_ptr.vmem [resolvable:$true] %s19_s16 }
   0x2   :  { %s1150_s18 = smov 8  }
   0x3   :  { %25 = dma.hbm_to_vmem [thread:$0]  %s18_s14, 3840, %s20_s16, [#allocation5], %s1149_s17, %s1149_s17, %s1150_s18  }
   0x4   :  { %1146 = dma.done.wait [#allocation5], 3840  }
   0x5   :  { %1147 = vsyncadd [#allocation5], 4294963456  ;;  %v1151_v0 = vmov 0   ;;  %v60_v1 = vld [vmem:[%s1375_s0] sm:$0xff]  ;;  %v45_v2 = vld [vmem:[#allocation4 + $0x78] sm:$0xff]  ;;  %vm79_vm0 = vcmask 261120   ;;  %v62_v30 = vlaneseq }
   0x6   :  { %1023 = vset.pattern.permute.xlu0 %v1151_v0  ;;  %86 = vmatpush.msra.mxu0 %v45_v2  ;;  %v44_v3 = vld [vmem:[#allocation4 + $0x70] sm:$0xff]  ;;  %v43_v4 = vld [vmem:[#allocation4 + $0x68] sm:$0xff]  ;;  %v42_v5 = vld [vmem:[#allocation4 + $0x60] sm:$0xff]  ;;  %v1152_v29 = vmov 0.0   ;;  %v1153_v33 = vmov 1.0   ;;  %vm135_vm3 = vcmask 1040384  }
   0x7   :  { %65 = vperm.xlu0 %1023, %v60_v1   ;;  %v61_v6 = vld [vmem:[%s1375_s0 + $0x8] sm:$0xff]  ;;  %v41_v7 = vld [vmem:[#allocation4 + $0x58] sm:$0xff]  ;;  %v48_v9 = vld [vmem:[#allocation4 + $0x90] sm:$0xff]  ;;  %v63_v31 = vand.u32 127, %v62_v30  ;;  %vm137_vm4 = vcmask 1041408   ;;  %s1155_s25 = smov 32  }
   0x8   :  { %87 = vmatpush.msra.mxu0 %v44_v3  ;;  %v49_v8 = vld [vmem:[#allocation4 + $0x98] sm:$0xff]  ;;  %v40_v10 = vld [vmem:[#allocation4 + $0x50] sm:$0xff]  ;;  %v39_v11 = vld [vmem:[#allocation4 + $0x48] sm:$0xff] }
   0x9   :  { %121 = vmatpush.msra.mxu1 %v49_v8  ;;  %v38_v12 = vld [vmem:[#allocation4 + $0x40] sm:$0xff]  ;;  %v37_v13 = vld [vmem:[#allocation4 + $0x38] sm:$0xff]  ;;  %v36_v14 = vld [vmem:[#allocation4 + $0x30] sm:$0xff] }
   0xa   :  { %88 = vmatpush.msra.mxu0 %v43_v4  ;;  %v35_v15 = vld [vmem:[#allocation4 + $0x28] sm:$0xff]  ;;  %v34_v16 = vld [vmem:[#allocation4 + $0x20] sm:$0xff]  ;;  %v33_v17 = vld [vmem:[#allocation4 + $0x18] sm:$0xff] }
   0xb   :  { %122 = vmatpush.msra.mxu1 %v48_v9  ;;  %v32_v18 = vld [vmem:[#allocation4 + $0x10] sm:$0xff]  ;;  %v31_v19 = vld [vmem:[#allocation4 + $0x8] sm:$0xff]  ;;  %v30_v20 = vld [vmem:[#allocation4] sm:$0xff] }
   0xc   :  { %89 = vmatpush.msra.mxu0 %v42_v5  ;;  %v47_v21 = vld [vmem:[#allocation4 + $0x88] sm:$0xff]  ;;  %v46_v22 = vld [vmem:[#allocation4 + $0x80] sm:$0xff]  ;;  %v1188_v24 = vld [vmem:[#allocation4 + $0xb8] sm:$0xff] }
   0xd   :  { %123 = vmatpush.msra.mxu1 %v47_v21  ;;  %v76_v23 = vld [vmem:[%s1376_s1] sm:$0xff]  ;;  %211 = vmatpush.msra.mxu2 %v1188_v24  ;;  %v1191_v25 = vld [vmem:[#allocation4 + $0xb0] sm:$0xff]  ;;  %v1199_v26 = vld [vmem:[#allocation4 + $0xa8] sm:$0xff] }
   0xe   :  { %90 = vmatpush.msra.mxu0 %v41_v7  ;;  %277 = vmatpush.msra.mxu3 %v1188_v24  ;;  %v1203_v27 = vld [vmem:[#allocation4 + $0xa0] sm:$0xff]  ;;  %v77_v28 = vld [vmem:[%s1376_s1 + $0x8] sm:$0xff]  ;;  %s1154_s1 = smov 64  }
   0xf   :  { %68 = vperm.xlu0 %1023, %v61_v6   ;;  %124 = vmatpush.msra.mxu1 %v46_v22  ;;  %v1024_v36 = vld [vmem:[#allocation4 + $0xe0] ss:$0 sm:$0xff] }
  0x10   :  { %91 = vmatpush.msra.mxu0 %v40_v10  ;;  %974 = vmatmul.msk.f32.vlgmr.msra.gmra.mxu1 %vm79_vm0, %v76_v23 }
  0x11   :  { %212 = vmatpush.msra.mxu2 %v1191_v25  ;;  %478 = vmatpush.msrb.mxu1 %v1188_v24 }
  0x12   :  { %92 = vmatpush.msra.mxu0 %v39_v11  ;;  %278 = vmatpush.msra.mxu3 %v1191_v25 }
  0x13   :  { %479 = vmatpush.msrb.mxu1 %v1191_v25  ;;  %213 = vmatpush.msra.mxu2 %v1199_v26 }
  0x14   :  { %93 = vmatpush.msra.mxu0 %v38_v12  ;;  %279 = vmatpush.msra.mxu3 %v1199_v26 }
  0x15   :  { %480 = vmatpush.msrb.mxu1 %v1199_v26  ;;  %214 = vmatpush.msra.mxu2 %v1203_v27 }
  0x16   :  { %94 = vmatpush.msra.mxu0 %v37_v13  ;;  %280 = vmatpush.msra.mxu3 %v1203_v27 }
  0x17   :  { %215 = vmatmul.f32.vlgmr.msra.gmra.mxu2 %v1152_v29  ;;  %481 = vmatpush.msrb.mxu1 %v1203_v27 }
  0x18   :  { %95 = vmatpush.msra.mxu0 %v36_v14  ;;  %975 = vmatmul.msk.f32.gmra.mxu1 %vm79_vm0, %v77_v28 }
  0x19   :  { %344 = vmatpush.msrb.mxu2 %v1188_v24  ;;  %411 = vmatpush.msrb.mxu3 %v1188_v24 }
  0x1a   :  { %96 = vmatpush.msra.mxu0 %v35_v15  ;;  %679 = vmatpush.msra.mxu1 %v1188_v24 }
  0x1b   :  { %345 = vmatpush.msrb.mxu2 %v1191_v25  ;;  %412 = vmatpush.msrb.mxu3 %v1191_v25 }
  0x1c   :  { %97 = vmatpush.msra.mxu0 %v34_v16  ;;  %680 = vmatpush.msra.mxu1 %v1191_v25 }
  0x1d   :  { %346 = vmatpush.msrb.mxu2 %v1199_v26  ;;  %413 = vmatpush.msrb.mxu3 %v1199_v26 }
  0x1e   :  { %98 = vmatpush.msra.mxu0 %v33_v17  ;;  %681 = vmatpush.msra.mxu1 %v1199_v26 }
  0x1f   :  { %347 = vmatpush.msrb.mxu2 %v1203_v27  ;;  %414 = vmatpush.msrb.mxu3 %v1203_v27 }
  0x20   :  { %99 = vmatpush.msra.mxu0 %v32_v18  ;;  %682 = vmatpush.msra.mxu1 %v1203_v27 }
  0x21   :  { %545 = vmatpush.msra.mxu2 %v1188_v24 }
  0x22   :  { %100 = vmatpush.msra.mxu0 %v31_v19 }
  0x23   :  { %546 = vmatpush.msra.mxu2 %v1191_v25 }
  0x24   :  { %101 = vmatpush.msra.mxu0 %v30_v20 }
  0x25   :  { %547 = vmatpush.msra.mxu2 %v1199_v26 }
  0x27   :  { %548 = vmatpush.msra.mxu2 %v1203_v27 }
  0x79   :  { %v66_v32 = vpop.permute.xlu0 %65 }
  0x7a   :  { %vm70_vm1 = vcmp.eq.s32.totalorder %v66_v32, %v63_v31 }
  0x7b   :  { %972 = vmatmul.msk.f32.vlgmr.msra.gmra.mxu0 %vm70_vm1, %v1153_v33 }
  0x81   :  { %v69_v34 = vpop.permute.xlu0 %68 }
  0x82   :  { %vm71_vm2 = vcmp.eq.s32.totalorder %v69_v34, %v63_v31 }
  0x83   :  { %973 = vmatmul.msk.f32.gmra.mxu0 %vm71_vm2, %v1153_v33 }
  0x8d   :  { %v126_v35 = vpop.f32.mrf.mxu1 }
  0x95   :  { %v129_v41 = vpop.f32.mrf.mxu1 }
  0x9a   :  { %v216_v55 = vpop.f32.mrf.mxu2 }
  0xf8   :  { %v103_v37 = vpop.f32.mrf.mxu0 }
  0xf9   :  { %v104_v38 = vadd.f32 %v1024_v36, %v103_v37 }
  0xfb   :  { %v127_v39 = vadd.f32 %v126_v35, %v104_v38 }
  0xfd   :  { %v141_v44 = vrot.slane %v127_v39, 1  ;;  %v147_v45 = vrot.slane %v127_v39, 2  ;;  %v155_v46 = vrot.slane %v127_v39, 3  ;;  %v163_v47 = vrot.slane %v127_v39, 4 }
  0xfe   :  { %v171_v48 = vrot.slane %v127_v39, 5  ;;  %v179_v49 = vrot.slane %v127_v39, 6  ;;  %v187_v50 = vrot.slane %v127_v39, 7 }
 0x100   :  { %v106_v40 = vpop.f32.mrf.mxu0 }
 0x101   :  { %v107_v42 = vadd.f32 %v1024_v36, %v106_v40 }
 0x103   :  { %v130_v43 = vadd.f32 %v129_v41, %v107_v42 }
 0x105   :  { %v133_v51 = vrot.slane %v130_v43, 7  ;;  %v143_v52 = vsel %vm135_vm3, %v141_v44, %v130_v43  ;;  %v149_v53 = vrot.slane %v130_v43, 1  ;;  %v157_v54 = vrot.slane %v130_v43, 2 }
 0x106   :  { %v1231_v56 = vsel %vm137_vm4, %v143_v52, 0.0  ;;  %v165_v57 = vrot.slane %v130_v43, 3  ;;  %v173_v58 = vrot.slane %v130_v43, 4  ;;  %v181_v59 = vrot.slane %v130_v43, 5 }
 0x107   :  { %v136_v60 = vsel %vm135_vm3, %v127_v39, %v133_v51  ;;  %v151_v61 = vsel %vm135_vm3, %v147_v45, %v149_v53  ;;  %v159_v62 = vsel %vm135_vm3, %v155_v46, %v157_v54  ;;  %v189_v63 = vrot.slane %v130_v43, 6 }
 0x108   :  { %v138_v0 = vsel %vm137_vm4, %v136_v60, 0.0  ;;  %v1238_v1 = vsel %vm137_vm4, %v151_v61, 0.0  ;;  %v1241_v2 = vsel %vm137_vm4, %v159_v62, 0.0  ;;  %v167_v3 = vsel %vm135_vm3, %v163_v47, %v165_v57 }
 0x109   :  { %v219_v4 = vadd.f32 %v216_v55, %v138_v0  ;;  %v1245_v5 = vsel %vm137_vm4, %v167_v3, 0.0  ;;  %v175_v6 = vsel %vm135_vm3, %v171_v48, %v173_v58  ;;  %v183_v7 = vsel %vm135_vm3, %v179_v49, %v181_v59 }
 0x10a   :  { %v1250_v8 = vsel %vm137_vm4, %v175_v6, 0.0  ;;  %v1253_v9 = vsel %vm137_vm4, %v183_v7, 0.0  ;;  %v191_v10 = vsel %vm135_vm3, %v187_v50, %v189_v63 }
 0x10b   :  { %1026 = vtanh.f32 %v219_v4  ;;  %v1257_v11 = vsel %vm137_vm4, %v191_v10, 0.0  ;;  %v976_v13 = vmul.f32 -1.442695, %v219_v4 }
 0x10d   :  { %1028 = vpow2.f32 %v976_v13 }
 0x111   :  { %v1027_v12 = vpop.eup %1026 }
 0x112   :  { %242 = vrot.lane.b32.xlu1 %v1027_v12, %s1154_s1 }
 0x113   :  { %v1029_v14 = vpop.eup %1028 }
 0x114   :  { %v223_v15 = vadd.f32 1.0, %v1029_v14 }
 0x116   :  { %1030 = vrcp.f32 %v223_v15  ;;  %v235_v21 = vand.u32 2147483648, %v223_v15  ;;  %vm229_vm6 = vweird.f32 %v223_v15  ;;  %v233_v22 = vand.u32 2147483647, %v223_v15 }
 0x118   :  { %v236_v28 = vor.u32 1.1754944e-38, %v235_v21  ;;  %vm234_vm8 = vcmp.eq.f32.partialorder %v233_v22, 8.507059e+37 }
 0x11c   :  { %v1031_v16 = vpop.eup %1030 }
 0x11d   :  { %v225_v17 = vmul.f32 %v1031_v16, %v223_v15  ;;  %vm230_vm5 = vweird.f32 %v1031_v16 }
 0x11e   :  { %vm231_vm7 = vmor %vm229_vm6, %vm230_vm5 }
 0x11f   :  { %v226_v18 = vsub.f32 1.0, %v225_v17 }
 0x121   :  { %v227_v19 = vmul.f32 %v1031_v16, %v226_v18 }
 0x123   :  { %v228_v20 = vadd.f32 %v1031_v16, %v227_v19 }
 0x125   :  { %v232_v23 = vsel %vm231_vm7, %v1031_v16, %v228_v20 }
 0x126   :  { %v237_v30 = vsel %vm234_vm8, %v236_v28, %v232_v23 }
 0x127   :  { %v240_v32 = vmul.f32 0.0, %v237_v30 }
 0x184   :  { %v243_v29 = vpop.permute.xlu1 %242 }
 0x185   :  { %v245_v31 = vmul.f32 %v243_v29, %v237_v30 }
 0x187   :  { %247 = vrot.lane.b32.xlu1 %v245_v31, %s1155_s25 }
 0x1f9   :  { %v248_v33 = vpop.permute.xlu1 %247 }
 0x1fa   :  { %v250_v34 = vadd.f32 %v248_v33, %v240_v32 }
 0x1fc   :  { %1032 = vtanh.f32 %v250_v34 }
 0x202   :  { %v1033_v35 = vpop.eup %1032 }
 0x203   :  { %253 = vrot.lane.b32.xlu2 %v1033_v35, %s1154_s1 }
 0x25d   :  { %v254_v36 = vpop.permute.xlu2 %253 }
 0x25e   :  { %v256_v37 = vmul.f32 %v254_v36, %v237_v30 }
 0x260   :  { %258 = vrot.lane.b32.xlu2 %v256_v37, %s1155_s25 }
 0x2ba   :  { %v259_v38 = vpop.permute.xlu2 %258 }
 0x2bb   :  { %261 = vst.msk [vmem:[#allocation3] sm:$0xff] %vm79_vm0, %v259_v38  ;;  %977 = vmatmul.msk.f32.vlgmr.msra.gmra.mxu3 %vm79_vm0, %v259_v38 }
 0x2bc   :  { %612 = vmatpush.msra.mxu3 %v1188_v24 }
 0x2be   :  { %613 = vmatpush.msra.mxu3 %v1191_v25 }
 0x2c0   :  { %614 = vmatpush.msra.mxu3 %v1199_v26 }
 0x2c2   :  { %615 = vmatpush.msra.mxu3 %v1203_v27 }
 0x33e   :  { %v282_v39 = vpop.f32.mrf.mxu3 }
 0x33f   :  { %v285_v40 = vadd.f32 %v282_v39, %v1231_v56 }
 0x341   :  { %1034 = vtanh.f32 %v285_v40  ;;  %v978_v42 = vmul.f32 -1.442695, %v285_v40 }
 0x343   :  { %1036 = vpow2.f32 %v978_v42 }
 0x347   :  { %v1035_v41 = vpop.eup %1034 }
 0x348   :  { %308 = vrot.lane.b32.xlu0 %v1035_v41, %s1154_s1 }
 0x349   :  { %v1037_v43 = vpop.eup %1036 }
 0x34a   :  { %v289_v44 = vadd.f32 1.0, %v1037_v43 }
 0x34c   :  { %1038 = vrcp.f32 %v289_v44  ;;  %v301_v26 = vand.u32 2147483648, %v289_v44  ;;  %vm295_vm10 = vweird.f32 %v289_v44  ;;  %v299_v27 = vand.u32 2147483647, %v289_v44 }
 0x34e   :  { %v302_v49 = vor.u32 1.1754944e-38, %v301_v26  ;;  %vm300_vm12 = vcmp.eq.f32.partialorder %v299_v27, 8.507059e+37 }
 0x352   :  { %v1039_v45 = vpop.eup %1038 }
 0x353   :  { %v291_v24 = vmul.f32 %v1039_v45, %v289_v44  ;;  %vm296_vm9 = vweird.f32 %v1039_v45 }
 0x354   :  { %vm297_vm11 = vmor %vm295_vm10, %vm296_vm9 }
 0x355   :  { %v292_v46 = vsub.f32 1.0, %v291_v24 }
 0x357   :  { %v293_v25 = vmul.f32 %v1039_v45, %v292_v46 }
 0x359   :  { %v294_v47 = vadd.f32 %v1039_v45, %v293_v25 }
 0x35b   :  { %v298_v48 = vsel %vm297_vm11, %v1039_v45, %v294_v47 }
 0x35c   :  { %v303_v51 = vsel %vm300_vm12, %v302_v49, %v298_v48 }
 0x35d   :  { %v306_v53 = vmul.f32 %v303_v51, %v250_v34 }
 0x3ba   :  { %v309_v50 = vpop.permute.xlu0 %308 }
 0x3bb   :  { %v311_v52 = vmul.f32 %v309_v50, %v303_v51 }
 0x3bd   :  { %313 = vrot.lane.b32.xlu1 %v311_v52, %s1155_s25 }
 0x42f   :  { %v314_v54 = vpop.permute.xlu1 %313 }
 0x430   :  { %v316_v55 = vadd.f32 %v314_v54, %v306_v53 }
 0x432   :  { %1040 = vtanh.f32 %v316_v55 }
 0x438   :  { %v1041_v56 = vpop.eup %1040 }
 0x439   :  { %319 = vrot.lane.b32.xlu2 %v1041_v56, %s1154_s1 }
 0x493   :  { %v320_v57 = vpop.permute.xlu2 %319 }
 0x494   :  { %v322_v58 = vmul.f32 %v320_v57, %v303_v51 }
 0x496   :  { %324 = vrot.lane.b32.xlu0 %v322_v58, %s1155_s25 }
 0x508   :  { %v325_v59 = vpop.permute.xlu0 %324 }
 0x509   :  { %328 = vst.msk [vmem:[#allocation3 + $0x8] sm:$0xff] %vm79_vm0, %v325_v59  ;;  %979 = vmatmul.msk.f32.vlgmr.msrb.gmra.mxu2 %vm79_vm0, %v325_v59 }
 0x58c   :  { %v349_v60 = vpop.f32.mrf.mxu2 }
 0x58d   :  { %v352_v61 = vadd.f32 %v349_v60, %v1238_v1 }
 0x58f   :  { %1042 = vtanh.f32 %v352_v61  ;;  %v980_v63 = vmul.f32 -1.442695, %v352_v61 }
 0x591   :  { %1044 = vpow2.f32 %v980_v63 }
 0x595   :  { %v1043_v62 = vpop.eup %1042 }
 0x596   :  { %375 = vrot.lane.b32.xlu1 %v1043_v62, %s1154_s1 }
 0x597   :  { %v1045_v0 = vpop.eup %1044 }
 0x598   :  { %v356_v3 = vadd.f32 1.0, %v1045_v0 }
 0x59a   :  { %1046 = vrcp.f32 %v356_v3  ;;  %v368_v13 = vand.u32 2147483648, %v356_v3  ;;  %vm362_vm14 = vweird.f32 %v356_v3  ;;  %v366_v14 = vand.u32 2147483647, %v356_v3 }
 0x59c   :  { %v369_v15 = vor.u32 1.1754944e-38, %v368_v13  ;;  %vm367_vm1 = vcmp.eq.f32.partialorder %v366_v14, 8.507059e+37 }
 0x5a0   :  { %v1047_v4 = vpop.eup %1046 }
 0x5a1   :  { %v358_v6 = vmul.f32 %v1047_v4, %v356_v3  ;;  %vm363_vm13 = vweird.f32 %v1047_v4 }
 0x5a2   :  { %vm364_vm15 = vmor %vm362_vm14, %vm363_vm13 }
 0x5a3   :  { %v359_v7 = vsub.f32 1.0, %v358_v6 }
 0x5a5   :  { %v360_v10 = vmul.f32 %v1047_v4, %v359_v7 }
 0x5a7   :  { %v361_v12 = vadd.f32 %v1047_v4, %v360_v10 }
 0x5a9   :  { %v365_v1 = vsel %vm364_vm15, %v1047_v4, %v361_v12 }
 0x5aa   :  { %v370_v17 = vsel %vm367_vm1, %v369_v15, %v365_v1  ;;  %v57_v1 = vld [vmem:[#allocation4 + $0xd8] sm:$0xff]  ;;  %v56_v15 = vld [vmem:[#allocation4 + $0xd0] sm:$0xff] }
 0x5ab   :  { %v373_v19 = vmul.f32 %v370_v17, %v316_v55  ;;  %1007 = vmatpush.msrb.mxu2 %v57_v1 }
 0x5ad   :  { %1009 = vmatpush.msrb.mxu2 %v56_v15 }
 0x608   :  { %v376_v16 = vpop.permute.xlu1 %375 }
 0x609   :  { %v378_v18 = vmul.f32 %v376_v16, %v370_v17  ;;  %v55_v16 = vld [vmem:[#allocation4 + $0xc8] sm:$0xff] }
 0x60a   :  { %1011 = vmatpush.msrb.mxu2 %v55_v16 }
 0x60b   :  { %380 = vrot.lane.b32.xlu2 %v378_v18, %s1155_s25 }
 0x665   :  { %v381_v20 = vpop.permute.xlu2 %380 }
 0x666   :  { %v383_v21 = vadd.f32 %v381_v20, %v373_v19 }
 0x668   :  { %1048 = vtanh.f32 %v383_v21 }
 0x66e   :  { %v1049_v22 = vpop.eup %1048 }
 0x66f   :  { %386 = vrot.lane.b32.xlu0 %v1049_v22, %s1154_s1 }
 0x6e1   :  { %v387_v23 = vpop.permute.xlu0 %386 }
 0x6e2   :  { %v389_v28 = vmul.f32 %v387_v23, %v370_v17  ;;  %v54_v17 = vld [vmem:[#allocation4 + $0xc0] sm:$0xff] }
 0x6e3   :  { %1013 = vmatpush.msrb.mxu2 %v54_v17 }
 0x6e4   :  { %391 = vrot.lane.b32.xlu1 %v389_v28, %s1155_s25  ;;  %v1307_v28 = vld [vmem:[#allocation4 + $0xe8] ss:$0 sm:$0xff] }
 0x756   :  { %v392_v29 = vpop.permute.xlu1 %391 }
 0x757   :  { %395 = vst.msk [vmem:[#allocation3 + $0x10] sm:$0xff] %vm79_vm0, %v392_v29  ;;  %981 = vmatmul.msk.f32.vlgmr.msrb.gmra.mxu3 %vm79_vm0, %v392_v29 }
 0x758   :  { %1008 = vmatpush.msrb.mxu3 %v57_v1 }
 0x75a   :  { %1010 = vmatpush.msrb.mxu3 %v56_v15 }
 0x75c   :  { %1012 = vmatpush.msrb.mxu3 %v55_v16 }
 0x75e   :  { %1014 = vmatpush.msrb.mxu3 %v54_v17  ;;  %v733_v19 = vld [vmem:[#allocation3 + $0x10] sm:$0xff] }
 0x7da   :  { %v416_v30 = vpop.f32.mrf.mxu3 }
 0x7db   :  { %v419_v31 = vadd.f32 %v416_v30, %v1241_v2 }
 0x7dd   :  { %1050 = vtanh.f32 %v419_v31  ;;  %v982_v33 = vmul.f32 -1.442695, %v419_v31 }
 0x7df   :  { %1052 = vpow2.f32 %v982_v33 }
 0x7e3   :  { %v1051_v32 = vpop.eup %1050 }
 0x7e4   :  { %442 = vrot.lane.b32.xlu2 %v1051_v32, %s1154_s1 }
 0x7e5   :  { %v1053_v34 = vpop.eup %1052 }
 0x7e6   :  { %v423_v35 = vadd.f32 1.0, %v1053_v34 }
 0x7e8   :  { %1054 = vrcp.f32 %v423_v35  ;;  %v435_v41 = vand.u32 2147483648, %v423_v35  ;;  %vm429_vm3 = vweird.f32 %v423_v35  ;;  %v433_v42 = vand.u32 2147483647, %v423_v35 }
 0x7ea   :  { %v436_v43 = vor.u32 1.1754944e-38, %v435_v41  ;;  %vm434_vm5 = vcmp.eq.f32.partialorder %v433_v42, 8.507059e+37 }
 0x7ee   :  { %v1055_v36 = vpop.eup %1054 }
 0x7ef   :  { %v425_v37 = vmul.f32 %v1055_v36, %v423_v35  ;;  %vm430_vm2 = vweird.f32 %v1055_v36 }
 0x7f0   :  { %vm431_vm4 = vmor %vm429_vm3, %vm430_vm2 }
 0x7f1   :  { %v426_v38 = vsub.f32 1.0, %v425_v37 }
 0x7f3   :  { %v427_v39 = vmul.f32 %v1055_v36, %v426_v38 }
 0x7f5   :  { %v428_v40 = vadd.f32 %v1055_v36, %v427_v39 }
 0x7f7   :  { %v432_v2 = vsel %vm431_vm4, %v1055_v36, %v428_v40 }
 0x7f8   :  { %v437_v45 = vsel %vm434_vm5, %v436_v43, %v432_v2 }
 0x7f9   :  { %v440_v46 = vmul.f32 %v437_v45, %v383_v21 }
 0x83e   :  { %v443_v44 = vpop.permute.xlu2 %442 }
 0x83f   :  { %v445_v24 = vmul.f32 %v443_v44, %v437_v45 }
 0x841   :  { %447 = vrot.lane.b32.xlu0 %v445_v24, %s1155_s25 }
 0x8b3   :  { %v448_v25 = vpop.permute.xlu0 %447 }
 0x8b4   :  { %v450_v47 = vadd.f32 %v448_v25, %v440_v46 }
 0x8b6   :  { %1056 = vtanh.f32 %v450_v47 }
 0x8bc   :  { %v1057_v26 = vpop.eup %1056 }
 0x8bd   :  { %453 = vrot.lane.b32.xlu1 %v1057_v26, %s1154_s1 }
 0x92f   :  { %v454_v27 = vpop.permute.xlu1 %453 }
 0x930   :  { %v456_v48 = vmul.f32 %v454_v27, %v437_v45 }
 0x932   :  { %458 = vrot.lane.b32.xlu2 %v456_v48, %s1155_s25 }
 0x98c   :  { %v459_v49 = vpop.permute.xlu2 %458 }
 0x98d   :  { %462 = vst.msk [vmem:[#allocation3 + $0x18] sm:$0xff] %vm79_vm0, %v459_v49  ;;  %983 = vmatmul.msk.f32.vlgmr.msrb.gmra.mxu1 %vm79_vm0, %v459_v49 }
 0x98e   :  { %776 = vmatpush.msrb.mxu1 %v57_v1 }
 0x990   :  { %777 = vmatpush.msrb.mxu1 %v56_v15 }
 0x992   :  { %778 = vmatpush.msrb.mxu1 %v55_v16 }
 0x994   :  { %779 = vmatpush.msrb.mxu1 %v54_v17  ;;  %v734_v20 = vld [vmem:[#allocation3 + $0x18] sm:$0xff] }
 0xa0a   :  { %v483_v50 = vpop.f32.mrf.mxu1 }
 0xa0b   :  { %v486_v51 = vadd.f32 %v483_v50, %v1245_v5 }
 0xa0d   :  { %1058 = vtanh.f32 %v486_v51  ;;  %v984_v53 = vmul.f32 -1.442695, %v486_v51 }
 0xa0f   :  { %1060 = vpow2.f32 %v984_v53 }
 0xa13   :  { %v1059_v52 = vpop.eup %1058 }
 0xa14   :  { %509 = vrot.lane.b32.xlu0 %v1059_v52, %s1154_s1 }
 0xa15   :  { %v1061_v54 = vpop.eup %1060 }
 0xa16   :  { %v490_v55 = vadd.f32 1.0, %v1061_v54 }
 0xa18   :  { %1062 = vrcp.f32 %v490_v55  ;;  %v502_v61 = vand.u32 2147483648, %v490_v55  ;;  %vm496_vm7 = vweird.f32 %v490_v55  ;;  %v500_v62 = vand.u32 2147483647, %v490_v55 }
 0xa1a   :  { %v503_v63 = vor.u32 1.1754944e-38, %v502_v61  ;;  %vm501_vm9 = vcmp.eq.f32.partialorder %v500_v62, 8.507059e+37 }
 0xa1e   :  { %v1063_v56 = vpop.eup %1062 }
 0xa1f   :  { %v492_v57 = vmul.f32 %v1063_v56, %v490_v55  ;;  %vm497_vm6 = vweird.f32 %v1063_v56 }
 0xa20   :  { %vm498_vm8 = vmor %vm496_vm7, %vm497_vm6 }
 0xa21   :  { %v493_v58 = vsub.f32 1.0, %v492_v57 }
 0xa23   :  { %v494_v59 = vmul.f32 %v1063_v56, %v493_v58 }
 0xa25   :  { %v495_v60 = vadd.f32 %v1063_v56, %v494_v59 }
 0xa27   :  { %v499_v5 = vsel %vm498_vm8, %v1063_v56, %v495_v60 }
 0xa28   :  { %v504_v3 = vsel %vm501_vm9, %v503_v63, %v499_v5 }
 0xa29   :  { %v507_v6 = vmul.f32 %v504_v3, %v450_v47 }
 0xa86   :  { %v510_v0 = vpop.permute.xlu0 %509 }
 0xa87   :  { %v512_v4 = vmul.f32 %v510_v0, %v504_v3 }
 0xa89   :  { %514 = vrot.lane.b32.xlu1 %v512_v4, %s1155_s25 }
 0xafb   :  { %v515_v7 = vpop.permute.xlu1 %514 }
 0xafc   :  { %v1293_v10 = vadd.f32 %v515_v7, %v507_v6 }
 0xafe   :  { %1064 = vtanh.f32 %v1293_v10 }
 0xb04   :  { %v1065_v12 = vpop.eup %1064 }
 0xb05   :  { %520 = vrot.lane.b32.xlu2 %v1065_v12, %s1154_s1 }
 0xb5f   :  { %v521_v13 = vpop.permute.xlu2 %520 }
 0xb60   :  { %v523_v14 = vmul.f32 %v521_v13, %v504_v3 }
 0xb62   :  { %525 = vrot.lane.b32.xlu0 %v523_v14, %s1155_s25 }
 0xbd4   :  { %v526_v18 = vpop.permute.xlu0 %525 }
 0xbd5   :  { %529 = vst.msk [vmem:[#allocation3 + $0x20] sm:$0xff] %vm79_vm0, %v526_v18  ;;  %985 = vmatmul.msk.f32.vlgmr.msra.gmra.mxu2 %vm79_vm0, %v526_v18 }
 0xbdc   :  { %v735_v21 = vld [vmem:[#allocation3 + $0x20] sm:$0xff] }
 0xbdd   :  { %993 = vmatmul.msk.f32.vlgmr.msrb.gmra.mxu2 %vm79_vm0, %v733_v19 }
 0xbe5   :  { %994 = vmatmul.msk.f32.gmra.mxu2 %vm79_vm0, %v734_v20 }
 0xbed   :  { %995 = vmatmul.msk.f32.gmra.mxu2 %vm79_vm0, %v735_v21 }
 0xc58   :  { %v550_v22 = vpop.f32.mrf.mxu2 }
 0xc59   :  { %v1304_v23 = vadd.f32 %v550_v22, %v1250_v8 }
 0xc5b   :  { %1066 = vtanh.f32 %v1304_v23  ;;  %v986_v7 = vmul.f32 -1.442695, %v1304_v23 }
 0xc60   :  { %v787_v29 = vpop.f32.mrf.mxu2 }
 0xc61   :  { %v1067_v30 = vpop.eup %1066  ;;  %v788_v31 = vadd.f32 %v1307_v28, %v787_v29 }
 0xc62   :  { %576 = vrot.lane.b32.xlu1 %v1067_v30, %s1154_s1 }
 0xc63   :  { %v1001_v32 = vmul.f32 -1.442695, %v788_v31 }
 0xc65   :  { %1068 = vpow2.f32 %v1001_v32 }
 0xc68   :  { %v790_v33 = vpop.f32.mrf.mxu2 }
 0xc69   :  { %v791_v34 = vadd.f32 %v1307_v28, %v790_v33 }
 0xc6b   :  { %v1069_v35 = vpop.eup %1068  ;;  %v1002_v36 = vmul.f32 -1.442695, %v791_v34 }
 0xc6c   :  { %v831_v37 = vadd.f32 1.0, %v1069_v35 }
 0xc6d   :  { %1070 = vpow2.f32 %v1002_v36 }
 0xc6e   :  { %1072 = vrcp.f32 %v831_v37  ;;  %v878_v44 = vand.u32 2147483648, %v831_v37  ;;  %v876_v24 = vand.u32 2147483647, %v831_v37  ;;  %vm872_vm11 = vweird.f32 %v831_v37 }
 0xc70   :  { %v793_v8 = vpop.f32.mrf.mxu2  ;;  %v879_v26 = vor.u32 1.1754944e-38, %v878_v44  ;;  %vm877_vm13 = vcmp.eq.f32.partialorder %v876_v24, 8.507059e+37 }
 0xc71   :  { %v794_v38 = vadd.f32 %v1307_v28, %v793_v8 }
 0xc73   :  { %v1071_v39 = vpop.eup %1070  ;;  %v1003_v40 = vmul.f32 -1.442695, %v794_v38 }
 0xc74   :  { %v1073_v41 = vpop.eup %1072  ;;  %v832_v42 = vadd.f32 1.0, %v1071_v39 }
 0xc75   :  { %v868_v2 = vmul.f32 %v1073_v41, %v831_v37  ;;  %1074 = vpow2.f32 %v1003_v40  ;;  %vm873_vm10 = vweird.f32 %v1073_v41 }
 0xc76   :  { %1076 = vrcp.f32 %v832_v42  ;;  %vm874_vm12 = vmor %vm872_vm11, %vm873_vm10  ;;  %v893_v52 = vand.u32 2147483648, %v832_v42  ;;  %v891_v54 = vand.u32 2147483647, %v832_v42  ;;  %vm887_vm15 = vweird.f32 %v832_v42 }
 0xc77   :  { %v869_v43 = vsub.f32 1.0, %v868_v2 }
 0xc78   :  { %v894_v57 = vor.u32 1.1754944e-38, %v893_v52  ;;  %vm892_vm2 = vcmp.eq.f32.partialorder %v891_v54, 8.507059e+37 }
 0xc79   :  { %v870_v45 = vmul.f32 %v1073_v41, %v869_v43 }
 0xc7b   :  { %v1075_v46 = vpop.eup %1074  ;;  %v871_v25 = vadd.f32 %v1073_v41, %v870_v45 }
 0xc7c   :  { %v1077_v47 = vpop.eup %1076  ;;  %v833_v27 = vadd.f32 1.0, %v1075_v46 }
 0xc7d   :  { %v875_v48 = vsel %vm874_vm12, %v1073_v41, %v871_v25  ;;  %v883_v49 = vmul.f32 %v1077_v47, %v832_v42  ;;  %vm888_vm14 = vweird.f32 %v1077_v47 }
 0xc7e   :  { %v880_v50 = vsel %vm877_vm13, %v879_v26, %v875_v48  ;;  %1078 = vrcp.f32 %v833_v27  ;;  %vm889_vm1 = vmor %vm887_vm15, %vm888_vm14  ;;  %v908_v62 = vand.u32 2147483648, %v833_v27  ;;  %v906_v63 = vand.u32 2147483647, %v833_v27 }
 0xc7f   :  { %959 = vst [vmem:[%s1378_s3 + $0x10] sm:$0xff] %v880_v50  ;;  %v884_v51 = vsub.f32 1.0, %v883_v49  ;;  %vm902_vm4 = vweird.f32 %v833_v27  ;;  %1080 = vpow2.f32 %v986_v7 }
 0xc80   :  { %v909_v3 = vor.u32 1.1754944e-38, %v908_v62  ;;  %vm907_vm6 = vcmp.eq.f32.partialorder %v906_v63, 8.507059e+37 }
 0xc81   :  { %v885_v53 = vmul.f32 %v1077_v47, %v884_v51 }
 0xc83   :  { %v886_v55 = vadd.f32 %v1077_v47, %v885_v53 }
 0xc84   :  { %v1079_v56 = vpop.eup %1078 }
 0xc85   :  { %v890_v58 = vsel %vm889_vm1, %v1077_v47, %v886_v55  ;;  %v898_v59 = vmul.f32 %v1079_v56, %v833_v27  ;;  %vm903_vm3 = vweird.f32 %v1079_v56  ;;  %v1081_v12 = vpop.eup %1080 }
 0xc86   :  { %v895_v60 = vsel %vm892_vm2, %v894_v57, %v890_v58  ;;  %vm904_vm5 = vmor %vm902_vm4, %vm903_vm3  ;;  %v557_v13 = vadd.f32 1.0, %v1081_v12  ;;  %v731_v12 = vld [vmem:[#allocation3] sm:$0xff] }
 0xc87   :  { %960 = vst [vmem:[%s1378_s3 + $0x18] sm:$0xff] %v895_v60  ;;  %v899_v61 = vsub.f32 1.0, %v898_v59 }
 0xc88   :  { %1082 = vrcp.f32 %v557_v13  ;;  %v569_v18 = vand.u32 2147483648, %v557_v13  ;;  %vm563_vm8 = vweird.f32 %v557_v13  ;;  %v567_v19 = vand.u32 2147483647, %v557_v13 }
 0xc89   :  { %v900_v5 = vmul.f32 %v1079_v56, %v899_v61 }
 0xc8a   :  { %v570_v21 = vor.u32 1.1754944e-38, %v569_v18  ;;  %vm568_vm10 = vcmp.eq.f32.partialorder %v567_v19, 8.507059e+37 }
 0xc8b   :  { %v901_v0 = vadd.f32 %v1079_v56, %v900_v5 }
 0xc8d   :  { %v905_v4 = vsel %vm904_vm5, %v1079_v56, %v901_v0 }
 0xc8e   :  { %v910_v6 = vsel %vm907_vm6, %v909_v3, %v905_v4  ;;  %v1083_v14 = vpop.eup %1082 }
 0xc8f   :  { %961 = vst [vmem:[%s1378_s3 + $0x20] sm:$0xff] %v910_v6  ;;  %v559_v1 = vmul.f32 %v1083_v14, %v557_v13  ;;  %vm564_vm7 = vweird.f32 %v1083_v14 }
 0xc90   :  { %vm565_vm9 = vmor %vm563_vm8, %vm564_vm7 }
 0xc91   :  { %v560_v15 = vsub.f32 1.0, %v559_v1 }
 0xc93   :  { %v561_v16 = vmul.f32 %v1083_v14, %v560_v15 }
 0xc95   :  { %v562_v17 = vadd.f32 %v1083_v14, %v561_v16 }
 0xc97   :  { %v566_v20 = vsel %vm565_vm9, %v1083_v14, %v562_v17  ;;  %v732_v14 = vld [vmem:[#allocation3 + $0x8] sm:$0xff] }
 0xc98   :  { %v571_v29 = vsel %vm568_vm10, %v570_v21, %v566_v20 }
 0xc99   :  { %v574_v30 = vmul.f32 %v571_v29, %v1293_v10 }
 0xcd4   :  { %v577_v22 = vpop.permute.xlu1 %576 }
 0xcd5   :  { %v579_v23 = vmul.f32 %v577_v22, %v571_v29 }
 0xcd7   :  { %581 = vrot.lane.b32.xlu2 %v579_v23, %s1155_s25 }
 0xd31   :  { %v582_v31 = vpop.permute.xlu2 %581 }
 0xd32   :  { %v584_v32 = vadd.f32 %v582_v31, %v574_v30 }
 0xd34   :  { %1084 = vtanh.f32 %v584_v32 }
 0xd3a   :  { %v1085_v33 = vpop.eup %1084 }
 0xd3b   :  { %587 = vrot.lane.b32.xlu0 %v1085_v33, %s1154_s1 }
 0xdad   :  { %v588_v34 = vpop.permute.xlu0 %587 }
 0xdae   :  { %v590_v35 = vmul.f32 %v588_v34, %v571_v29 }
 0xdb0   :  { %592 = vrot.lane.b32.xlu1 %v590_v35, %s1155_s25 }
 0xe22   :  { %v593_v36 = vpop.permute.xlu1 %592 }
 0xe23   :  { %596 = vst.msk [vmem:[#allocation3 + $0x28] sm:$0xff] %vm79_vm0, %v593_v36  ;;  %987 = vmatmul.msk.f32.vlgmr.msra.gmra.mxu3 %vm79_vm0, %v593_v36 }
 0xe2a   :  { %v736_v37 = vld [vmem:[#allocation3 + $0x28] sm:$0xff] }
 0xe2b   :  { %996 = vmatmul.msk.f32.vlgmr.msrb.gmra.mxu3 %vm79_vm0, %v736_v37 }
 0xea6   :  { %v617_v8 = vpop.f32.mrf.mxu3 }
 0xea7   :  { %v620_v10 = vadd.f32 %v617_v8, %v1253_v9 }
 0xea9   :  { %1086 = vtanh.f32 %v620_v10  ;;  %v988_v48 = vmul.f32 -1.442695, %v620_v10 }
 0xeae   :  { %v796_v38 = vpop.f32.mrf.mxu3 }
 0xeaf   :  { %v1087_v39 = vpop.eup %1086  ;;  %v797_v40 = vadd.f32 %v1307_v28, %v796_v38 }
 0xeb0   :  { %643 = vrot.lane.b32.xlu2 %v1087_v39, %s1154_s1 }
 0xeb1   :  { %v1004_v41 = vmul.f32 -1.442695, %v797_v40 }
 0xeb3   :  { %1088 = vpow2.f32 %v1004_v41 }
 0xeb9   :  { %v1089_v42 = vpop.eup %1088 }
 0xeba   :  { %v834_v2 = vadd.f32 1.0, %v1089_v42 }
 0xebc   :  { %1090 = vrcp.f32 %v834_v2  ;;  %v923_v24 = vand.u32 2147483648, %v834_v2  ;;  %v921_v25 = vand.u32 2147483647, %v834_v2  ;;  %vm917_vm12 = vweird.f32 %v834_v2 }
 0xebd   :  { %1092 = vpow2.f32 %v988_v48 }
 0xebe   :  { %v924_v47 = vor.u32 1.1754944e-38, %v923_v24  ;;  %vm922_vm14 = vcmp.eq.f32.partialorder %v921_v25, 8.507059e+37 }
 0xec2   :  { %v1091_v43 = vpop.eup %1090 }
 0xec3   :  { %v913_v44 = vmul.f32 %v1091_v43, %v834_v2  ;;  %vm918_vm11 = vweird.f32 %v1091_v43  ;;  %v1093_v49 = vpop.eup %1092 }
 0xec4   :  { %vm919_vm13 = vmor %vm917_vm12, %vm918_vm11  ;;  %v624_v50 = vadd.f32 1.0, %v1093_v49 }
 0xec5   :  { %v914_v45 = vsub.f32 1.0, %v913_v44 }
 0xec6   :  { %1094 = vrcp.f32 %v624_v50  ;;  %v636_v56 = vand.u32 2147483648, %v624_v50  ;;  %vm630_vm1 = vweird.f32 %v624_v50  ;;  %v634_v57 = vand.u32 2147483647, %v624_v50 }
 0xec7   :  { %v915_v46 = vmul.f32 %v1091_v43, %v914_v45 }
 0xec8   :  { %v637_v59 = vor.u32 1.1754944e-38, %v636_v56  ;;  %vm635_vm3 = vcmp.eq.f32.partialorder %v634_v57, 8.507059e+37 }
 0xec9   :  { %v916_v9 = vadd.f32 %v1091_v43, %v915_v46 }
 0xecb   :  { %v920_v26 = vsel %vm919_vm13, %v1091_v43, %v916_v9 }
 0xecc   :  { %v925_v27 = vsel %vm922_vm14, %v924_v47, %v920_v26  ;;  %v1095_v51 = vpop.eup %1094 }
 0xecd   :  { %962 = vst [vmem:[%s1378_s3 + $0x28] sm:$0xff] %v925_v27  ;;  %v626_v52 = vmul.f32 %v1095_v51, %v624_v50  ;;  %vm631_vm15 = vweird.f32 %v1095_v51 }
 0xece   :  { %vm632_vm2 = vmor %vm630_vm1, %vm631_vm15 }
 0xecf   :  { %v627_v53 = vsub.f32 1.0, %v626_v52 }
 0xed1   :  { %v628_v54 = vmul.f32 %v1095_v51, %v627_v53 }
 0xed3   :  { %v629_v55 = vadd.f32 %v1095_v51, %v628_v54 }
 0xed5   :  { %v633_v58 = vsel %vm632_vm2, %v1095_v51, %v629_v55 }
 0xed6   :  { %v638_v61 = vsel %vm635_vm3, %v637_v59, %v633_v58 }
 0xed7   :  { %v641_v5 = vmul.f32 %v638_v61, %v584_v32 }
 0xf0a   :  { %v644_v60 = vpop.permute.xlu2 %643 }
 0xf0b   :  { %v646_v62 = vmul.f32 %v644_v60, %v638_v61 }
 0xf0d   :  { %648 = vrot.lane.b32.xlu0 %v646_v62, %s1155_s25 }
 0xf7f   :  { %v649_v63 = vpop.permute.xlu0 %648 }
 0xf80   :  { %v1337_v0 = vadd.f32 %v649_v63, %v641_v5 }
 0xf82   :  { %1096 = vtanh.f32 %v1337_v0 }
 0xf88   :  { %v1097_v3 = vpop.eup %1096 }
 0xf89   :  { %654 = vrot.lane.b32.xlu1 %v1097_v3, %s1154_s1 }
 0xffb   :  { %v655_v4 = vpop.permute.xlu1 %654 }
 0xffc   :  { %v657_v6 = vmul.f32 %v655_v4, %v638_v61 }
 0xffe   :  { %659 = vrot.lane.b32.xlu2 %v657_v6, %s1155_s25 }
0x1058   :  { %v660_v7 = vpop.permute.xlu2 %659 }
0x1059   :  { %663 = vst.msk [vmem:[#allocation3 + $0x30] sm:$0xff] %vm79_vm0, %v660_v7  ;;  %989 = vmatmul.msk.f32.vlgmr.msra.gmra.mxu1 %vm79_vm0, %v660_v7 }
0x1060   :  { %v737_v13 = vld [vmem:[#allocation3 + $0x30] sm:$0xff] }
0x1061   :  { %991 = vmatmul.msk.f32.vlgmr.msrb.gmra.mxu1 %vm79_vm0, %v731_v12  ;;  %997 = vmatmul.msk.f32.gmra.mxu3 %vm79_vm0, %v737_v13 }
0x1069   :  { %992 = vmatmul.msk.f32.gmra.mxu1 %vm79_vm0, %v732_v14 }
0x10d6   :  { %v684_v1 = vpop.f32.mrf.mxu1 }
0x10d7   :  { %v1348_v15 = vadd.f32 %v684_v1, %v1257_v11 }
0x10d9   :  { %1098 = vtanh.f32 %v1348_v15  ;;  %v990_v58 = vmul.f32 -1.442695, %v1348_v15 }
0x10de   :  { %v781_v16 = vpop.f32.mrf.mxu1 }
0x10df   :  { %v1099_v17 = vpop.eup %1098  ;;  %v782_v18 = vadd.f32 %v1307_v28, %v781_v16 }
0x10e0   :  { %710 = vrot.lane.b32.xlu0 %v1099_v17, %s1154_s1 }
0x10e1   :  { %v999_v19 = vmul.f32 -1.442695, %v782_v18 }
0x10e3   :  { %1100 = vpow2.f32 %v999_v19 }
0x10e4   :  { %v799_v20 = vpop.f32.mrf.mxu3 }
0x10e5   :  { %v800_v21 = vadd.f32 %v1307_v28, %v799_v20 }
0x10e6   :  { %v784_v22 = vpop.f32.mrf.mxu1 }
0x10e7   :  { %v1005_v29 = vmul.f32 -1.442695, %v800_v21  ;;  %v785_v23 = vadd.f32 %v1307_v28, %v784_v22 }
0x10e9   :  { %v1101_v30 = vpop.eup %1100  ;;  %1102 = vpow2.f32 %v1005_v29  ;;  %v1000_v11 = vmul.f32 -1.442695, %v785_v23 }
0x10ea   :  { %v829_v31 = vadd.f32 1.0, %v1101_v30 }
0x10eb   :  { %1104 = vpow2.f32 %v1000_v11 }
0x10ec   :  { %1106 = vrcp.f32 %v829_v31  ;;  %v848_v10 = vand.u32 2147483648, %v829_v31  ;;  %v846_v39 = vand.u32 2147483647, %v829_v31  ;;  %vm842_vm5 = vweird.f32 %v829_v31 }
0x10ee   :  { %v849_v2 = vor.u32 1.1754944e-38, %v848_v10  ;;  %vm847_vm7 = vcmp.eq.f32.partialorder %v846_v39, 8.507059e+37 }
0x10ef   :  { %v1103_v32 = vpop.eup %1102 }
0x10f0   :  { %v835_v33 = vadd.f32 1.0, %v1103_v32 }
0x10f1   :  { %v1105_v34 = vpop.eup %1104 }
0x10f2   :  { %v1107_v35 = vpop.eup %1106  ;;  %1108 = vrcp.f32 %v835_v33  ;;  %v830_v37 = vadd.f32 1.0, %v1105_v34  ;;  %v938_v46 = vand.u32 2147483648, %v835_v33  ;;  %v936_v47 = vand.u32 2147483647, %v835_v33 }
0x10f3   :  { %v838_v36 = vmul.f32 %v1107_v35, %v829_v31  ;;  %vm843_vm4 = vweird.f32 %v1107_v35  ;;  %vm932_vm9 = vweird.f32 %v835_v33 }
0x10f4   :  { %1110 = vrcp.f32 %v830_v37  ;;  %vm844_vm6 = vmor %vm842_vm5, %vm843_vm4  ;;  %v863_v48 = vand.u32 2147483648, %v830_v37  ;;  %v939_v49 = vor.u32 1.1754944e-38, %v938_v46  ;;  %v861_v51 = vand.u32 2147483647, %v830_v37 }
0x10f5   :  { %v839_v8 = vsub.f32 1.0, %v838_v36  ;;  %vm937_vm12 = vcmp.eq.f32.partialorder %v936_v47, 8.507059e+37  ;;  %vm857_vm13 = vweird.f32 %v830_v37  ;;  %1112 = vpow2.f32 %v990_v58 }
0x10f6   :  { %v864_v55 = vor.u32 1.1754944e-38, %v863_v48  ;;  %vm862_vm15 = vcmp.eq.f32.partialorder %v861_v51, 8.507059e+37 }
0x10f7   :  { %v840_v38 = vmul.f32 %v1107_v35, %v839_v8 }
0x10f8   :  { %v1109_v40 = vpop.eup %1108 }
0x10f9   :  { %v841_v41 = vadd.f32 %v1107_v35, %v840_v38  ;;  %v928_v42 = vmul.f32 %v1109_v40, %v835_v33  ;;  %vm933_vm8 = vweird.f32 %v1109_v40 }
0x10fa   :  { %v1111_v43 = vpop.eup %1110  ;;  %vm934_vm10 = vmor %vm932_vm9, %vm933_vm8 }
0x10fb   :  { %v845_v44 = vsel %vm844_vm6, %v1107_v35, %v841_v41  ;;  %v929_v45 = vsub.f32 1.0, %v928_v42  ;;  %v853_v25 = vmul.f32 %v1111_v43, %v830_v37  ;;  %vm858_vm11 = vweird.f32 %v1111_v43  ;;  %v1113_v59 = vpop.eup %1112 }
0x10fc   :  { %v850_v24 = vsel %vm847_vm7, %v849_v2, %v845_v44  ;;  %vm859_vm14 = vmor %vm857_vm13, %vm858_vm11  ;;  %v691_v60 = vadd.f32 1.0, %v1113_v59 }
0x10fd   :  { %957 = vst [vmem:[%s1378_s3] sm:$0xff] %v850_v24  ;;  %v930_v9 = vmul.f32 %v1109_v40, %v929_v45  ;;  %v854_v26 = vsub.f32 1.0, %v853_v25 }
0x10fe   :  { %1114 = vrcp.f32 %v691_v60  ;;  %v703_v4 = vand.u32 2147483648, %v691_v60  ;;  %vm697_vm2 = vweird.f32 %v691_v60  ;;  %v701_v6 = vand.u32 2147483647, %v691_v60 }
0x10ff   :  { %v931_v27 = vadd.f32 %v1109_v40, %v930_v9  ;;  %v855_v50 = vmul.f32 %v1111_v43, %v854_v26 }
0x1100   :  { %v704_v12 = vor.u32 1.1754944e-38, %v703_v4  ;;  %vm702_vm4 = vcmp.eq.f32.partialorder %v701_v6, 8.507059e+37 }
0x1101   :  { %v935_v52 = vsel %vm934_vm10, %v1109_v40, %v931_v27  ;;  %v856_v54 = vadd.f32 %v1111_v43, %v855_v50 }
0x1102   :  { %v940_v53 = vsel %vm937_vm12, %v939_v49, %v935_v52 }
0x1103   :  { %963 = vst [vmem:[%s1378_s3 + $0x30] sm:$0xff] %v940_v53  ;;  %v860_v56 = vsel %vm859_vm14, %v1111_v43, %v856_v54 }
0x1104   :  { %v865_v57 = vsel %vm862_vm15, %v864_v55, %v860_v56  ;;  %v1115_v61 = vpop.eup %1114 }
0x1105   :  { %958 = vst [vmem:[%s1378_s3 + $0x8] sm:$0xff] %v865_v57  ;;  %v693_v62 = vmul.f32 %v1115_v61, %v691_v60  ;;  %vm698_vm1 = vweird.f32 %v1115_v61 }
0x1106   :  { %vm699_vm3 = vmor %vm697_vm2, %vm698_vm1 }
0x1107   :  { %v694_v5 = vsub.f32 1.0, %v693_v62 }
0x1109   :  { %v695_v63 = vmul.f32 %v1115_v61, %v694_v5 }
0x110b   :  { %v696_v3 = vadd.f32 %v1115_v61, %v695_v63 }
0x110d   :  { %v700_v7 = vsel %vm699_vm3, %v1115_v61, %v696_v3 }
0x110e   :  { %v705_v14 = vsel %vm702_vm4, %v704_v12, %v700_v7 }
0x110f   :  { %v708_v15 = vmul.f32 %v705_v14, %v1337_v0 }
0x1152   :  { %v711_v13 = vpop.permute.xlu0 %710 }
0x1153   :  { %v713_v1 = vmul.f32 %v711_v13, %v705_v14 }
0x1155   :  { %715 = vrot.lane.b32.xlu1 %v713_v1, %s1155_s25 }
0x11c7   :  { %v716_v16 = vpop.permute.xlu1 %715 }
0x11c8   :  { %v718_v17 = vadd.f32 %v716_v16, %v708_v15 }
0x11ca   :  { %1116 = vtanh.f32 %v718_v17 }
0x11d0   :  { %v1117_v18 = vpop.eup %1116 }
0x11d1   :  { %721 = vrot.lane.b32.xlu2 %v1117_v18, %s1154_s1 }
0x122b   :  { %v722_v19 = vpop.permute.xlu2 %721 }
0x122c   :  { %v724_v20 = vmul.f32 %v722_v19, %v705_v14 }
0x122e   :  { %726 = vrot.lane.b32.xlu0 %v724_v20, %s1155_s25 }
0x12a0   :  { %v727_v21 = vpop.permute.xlu0 %726 }
0x12a1   :  { %730 = vst.msk [vmem:[#allocation3 + $0x38] sm:$0xff] %vm79_vm0, %v727_v21 }
0x12a8   :  { %v738_v22 = vld [vmem:[#allocation3 + $0x38] sm:$0xff] }
0x12a9   :  { %998 = vmatmul.msk.f32.gmra.mxu3 %vm79_vm0, %v738_v22 }
0x132c   :  { %v802_v29 = vpop.f32.mrf.mxu3 }
0x132d   :  { %v803_v23 = vadd.f32 %v1307_v28, %v802_v29 }
0x132f   :  { %v1006_v0 = vmul.f32 -1.442695, %v803_v23 }
0x1331   :  { %1118 = vpow2.f32 %v1006_v0 }
0x1337   :  { %v1119_v30 = vpop.eup %1118 }
0x1338   :  { %v836_v11 = vadd.f32 1.0, %v1119_v30 }
0x133a   :  { %1120 = vrcp.f32 %v836_v11  ;;  %v953_v34 = vand.u32 2147483648, %v836_v11  ;;  %v951_v36 = vand.u32 2147483647, %v836_v11  ;;  %vm947_vm6 = vweird.f32 %v836_v11 }
0x133c   :  { %v954_v8 = vor.u32 1.1754944e-38, %v953_v34  ;;  %vm952_vm0 = vcmp.eq.f32.partialorder %v951_v36, 8.507059e+37 }
0x1340   :  { %v1121_v31 = vpop.eup %1120 }
0x1341   :  { %v943_v32 = vmul.f32 %v1121_v31, %v836_v11  ;;  %vm948_vm5 = vweird.f32 %v1121_v31 }
0x1342   :  { %vm949_vm7 = vmor %vm947_vm6, %vm948_vm5 }
0x1343   :  { %v944_v33 = vsub.f32 1.0, %v943_v32 }
0x1345   :  { %v945_v35 = vmul.f32 %v1121_v31, %v944_v33 }
0x1347   :  { %v946_v37 = vadd.f32 %v1121_v31, %v945_v35 }
0x1349   :  { %v950_v10 = vsel %vm949_vm7, %v1121_v31, %v946_v37 }
0x134a   :  { %v955_v38 = vsel %vm952_vm0, %v954_v8, %v950_v10 }
0x134b   :  { %964 = vst [vmem:[%s1378_s3 + $0x38] sm:$0xff] %v955_v38 }
0x134c   :  { %969 = vsyncpa [#allocation5], 1 }

</bundles_post_ra>
